<compile_context>
chip_gen: v7x
topology: tpu7x:2x2x1
jax: 0.10.0
libtpu: 0.0.40
codegen_flags: <defaults>
</compile_context>

<pallas_src>
import functools

import jax
import jax.numpy as jnp
from jax.experimental import pallas as pl
from jax.experimental.pallas import tpu as pltpu


# ----------------------------------------------------------------------------
# Fused encoder kernel: grid=(S,), hidden carried in VMEM scratch
# ----------------------------------------------------------------------------
def _encoder_kernel(x_ref, len_ref, wi_ref, wh_ref, bi_ref, bh_ref,
                    out_ref, hfin_ref, h_scr):
    s = pl.program_id(0)
    H = h_scr.shape[1]

    @pl.when(s == 0)
    def _init():
        h_scr[...] = jnp.zeros_like(h_scr)

    x = x_ref[0]                # (B, E)   current timestep embedding
    h = h_scr[...]              # (B, H)   carried hidden

    # Fused-gate GRU cell (PyTorch gate order [r, z, n])
    gi = jnp.dot(x, wi_ref[...], preferred_element_type=jnp.float32) + bi_ref[...]
    gh = jnp.dot(h, wh_ref[...], preferred_element_type=jnp.float32) + bh_ref[...]
    r = jax.nn.sigmoid(gi[:, 0:H] + gh[:, 0:H])
    z = jax.nn.sigmoid(gi[:, H:2 * H] + gh[:, H:2 * H])
    n = jnp.tanh(gi[:, 2 * H:3 * H] + r * gh[:, 2 * H:3 * H])
    h_new = (1.0 - z) * n + z * h

    # pack_padded_sequence semantics: freeze hidden past each length,
    # zero the padded encoder outputs (pad_packed_sequence padding_value=0).
    valid = s < len_ref[...]                       # (B, 1) bool
    h_kept = jnp.where(valid, h_new, h)
    h_scr[...] = h_kept
    out_ref[0] = jnp.where(valid, h_new, 0.0)      # (B, H) timestep output
    hfin_ref[...] = h_kept                         # resident; last write wins


def run_encoder(emb_seq, lengths_b1, wi, wh, bi, bh):
    S, B, E = emb_seq.shape
    H = wh.shape[0]
    grid_spec = pltpu.PrefetchScalarGridSpec(
        num_scalar_prefetch=0,
        grid=(S,),
        in_specs=[
            pl.BlockSpec((1, B, E), lambda s: (s, 0, 0)),      # x_t
            pl.BlockSpec((B, 1), lambda s: (0, 0)),            # lengths (resident)
            pl.BlockSpec((E, 3 * H), lambda s: (0, 0)),        # Wi (resident)
            pl.BlockSpec((H, 3 * H), lambda s: (0, 0)),        # Wh (resident)
            pl.BlockSpec((1, 3 * H), lambda s: (0, 0)),        # bi (resident)
            pl.BlockSpec((1, 3 * H), lambda s: (0, 0)),        # bh (resident)
        ],
        out_specs=(
            pl.BlockSpec((1, B, H), lambda s: (s, 0, 0)),      # encoder outputs
            pl.BlockSpec((B, H), lambda s: (0, 0)),            # final hidden
        ),
        scratch_shapes=[pltpu.VMEM((B, H), jnp.float32)],
    )
    return pl.pallas_call(
        _encoder_kernel,
        out_shape=(jax.ShapeDtypeStruct((S, B, H), jnp.float32),
                   jax.ShapeDtypeStruct((B, H), jnp.float32)),
        grid_spec=grid_spec,
        compiler_params=pltpu.CompilerParams(dimension_semantics=("arbitrary",)),
    )(emb_seq, lengths_b1, wi, wh, bi, bh)


# ----------------------------------------------------------------------------
# Fused decoder + online-NLL kernel: grid=(T,)
# one step = embed + GRU + attn + project + picked-target logp + feedback
# ----------------------------------------------------------------------------
def _decoder_kernel(tf_ref,                                   # scalar prefetch (SMEM)
                    tgt_ref, h0_ref, enc_ref, emb_ref,
                    wi_ref, wh_ref, bi_ref, bh_ref,
                    wc_ref, bc_ref, wo_ref, bo_ref,
                    loss_ref,
                    h_scr, tok_scr, nll_scr, cnt_scr,
                    *, bos_token, pad_token):
    t = pl.program_id(0)
    B, H = h_scr.shape
    V = emb_ref.shape[0]

    @pl.when(t == 0)
    def _init():
        h_scr[...] = h0_ref[...]
        tok_scr[...] = jnp.full(tok_scr.shape, bos_token, jnp.int32)
        nll_scr[...] = jnp.zeros_like(nll_scr)
        cnt_scr[...] = jnp.zeros_like(cnt_scr)

    # ---- embedding lookup via one-hot matmul (gather on the MXU) ----
    tok = tok_scr[...]                                        # (B, 1) int32
    cols_v = jax.lax.broadcasted_iota(jnp.int32, (B, V), 1)
    onehot = (cols_v == tok).astype(jnp.float32)              # (B, V)
    x = jnp.dot(onehot, emb_ref[...], preferred_element_type=jnp.float32)  # (B, E)

    # ---- fused-gate GRU cell ----
    h = h_scr[...]
    gi = jnp.dot(x, wi_ref[...], preferred_element_type=jnp.float32) + bi_ref[...]
    gh = jnp.dot(h, wh_ref[...], preferred_element_type=jnp.float32) + bh_ref[...]
    r = jax.nn.sigmoid(gi[:, 0:H] + gh[:, 0:H])
    z = jax.nn.sigmoid(gi[:, H:2 * H] + gh[:, H:2 * H])
    n = jnp.tanh(gi[:, 2 * H:3 * H] + r * gh[:, 2 * H:3 * H])
    h_new = (1.0 - z) * n + z * h
    h_scr[...] = h_new

    # ---- Luong dot attention over resident encoder outputs (MXU) ----
    enc = enc_ref[...]                                        # (B, S, H)
    q3 = h_new.reshape(B, 1, H)
    scores = jnp.einsum("bqh,bsh->bqs", q3, enc,
                        preferred_element_type=jnp.float32)   # (B, 1, S)
    m = jnp.max(scores, axis=-1, keepdims=True)
    e = jnp.exp(scores - m)
    attn = e * pl.reciprocal(jnp.sum(e, axis=-1, keepdims=True), approx=True)
    ctx = jnp.einsum("bqs,bsh->bqh", attn, enc,
                     preferred_element_type=jnp.float32).reshape(B, H)

    # ---- concat -> tanh(Wc) -> Wo logits ----
    cat = jnp.concatenate([h_new, ctx], axis=-1)              # (B, 2H)
    hcat = jnp.tanh(
        jnp.dot(cat, wc_ref[...], preferred_element_type=jnp.float32) + bc_ref[...])
    logits = (jnp.dot(hcat, wo_ref[...], preferred_element_type=jnp.float32)
              + bo_ref[...])                                  # (B, V)

    # ---- online NLL (ignore_index = pad), no full log-softmax materialized ----
    lm = jnp.max(logits, axis=-1, keepdims=True)              # (B, 1)
    lse = lm + jnp.log(jnp.sum(jnp.exp(logits - lm), axis=-1, keepdims=True))
    tgt_t = tgt_ref[0]                                        # (B, 1) int32
    picked = jnp.sum(jnp.where(cols_v == tgt_t, logits, 0.0),
                     axis=-1, keepdims=True)                  # (B, 1) target logit
    logp_tgt = picked - lse                                   # (B, 1) log p(target)
    valid = (tgt_t != pad_token).astype(jnp.float32)
    nll_scr[...] = nll_scr[...] + (-jnp.sum(logp_tgt * valid))
    cnt_scr[...] = cnt_scr[...] + jnp.sum(valid)
    # running mean (last write = final loss); guards against all-padding.
    loss_ref[...] = nll_scr[...] / jnp.maximum(cnt_scr[...], 1.0)

    # ---- next input token: teacher forcing vs greedy (first argmax) ----
    cand = jnp.where(logits == lm, cols_v, V)
    greedy = jnp.min(cand, axis=-1, keepdims=True).astype(jnp.int32)  # (B, 1)
    use_tf = tf_ref[t] > 0
    tok_scr[...] = jnp.where(use_tf, tgt_t, greedy)


def run_decoder_loss(tf_mask, tgt_tb1, h0, enc_bsh, p, bos_token, pad_token):
    T, B, _ = tgt_tb1.shape
    S = enc_bsh.shape[1]
    H = h0.shape[1]
    V, E = p["dec_emb"].shape
    kernel = functools.partial(_decoder_kernel,
                               bos_token=bos_token, pad_token=pad_token)
    grid_spec = pltpu.PrefetchScalarGridSpec(
        num_scalar_prefetch=1,                                # tf_mask -> SMEM
        grid=(T,),
        in_specs=[
            pl.BlockSpec((1, B, 1), lambda t, tf: (t, 0, 0)),   # target tokens
            pl.BlockSpec((B, H), lambda t, tf: (0, 0)),         # h0 (resident)
            pl.BlockSpec((B, S, H), lambda t, tf: (0, 0, 0)),   # enc outputs (resident)
            pl.BlockSpec((V, E), lambda t, tf: (0, 0)),         # dec_emb
            pl.BlockSpec((E, 3 * H), lambda t, tf: (0, 0)),     # Wi
            pl.BlockSpec((H, 3 * H), lambda t, tf: (0, 0)),     # Wh
            pl.BlockSpec((1, 3 * H), lambda t, tf: (0, 0)),     # bi
            pl.BlockSpec((1, 3 * H), lambda t, tf: (0, 0)),     # bh
            pl.BlockSpec((2 * H, H), lambda t, tf: (0, 0)),     # Wc
            pl.BlockSpec((1, H), lambda t, tf: (0, 0)),         # bc
            pl.BlockSpec((H, V), lambda t, tf: (0, 0)),         # Wo
            pl.BlockSpec((1, V), lambda t, tf: (0, 0)),         # bo
        ],
        out_specs=pl.BlockSpec((1, 1), lambda t, tf: (0, 0)),   # scalar loss
        scratch_shapes=[pltpu.VMEM((B, H), jnp.float32),        # carried hidden
                        pltpu.VMEM((B, 1), jnp.int32),          # carried token
                        pltpu.VMEM((1, 1), jnp.float32),        # running NLL sum
                        pltpu.VMEM((1, 1), jnp.float32)],       # running count
    )
    out = pl.pallas_call(
        kernel,
        out_shape=jax.ShapeDtypeStruct((1, 1), jnp.float32),
        grid_spec=grid_spec,
        compiler_params=pltpu.CompilerParams(dimension_semantics=("arbitrary",)),
    )(tf_mask, tgt_tb1, h0, enc_bsh,
      p["dec_emb"], p["dec_wi"], p["dec_wh"], p["dec_bi"], p["dec_bh"],
      p["wc"], p["bc"], p["wo"], p["bo"])
    return out[0, 0]


# ----------------------------------------------------------------------------
# Parameter init (deterministic, synthetic; fused-gate weight layout)
# ----------------------------------------------------------------------------
def _uniform(key, shape, scale=0.1):
    return jax.random.uniform(key, shape, jnp.float32, -scale, scale)


def init_params(key, vocab, emb_dim, hid_dim):
    ks = jax.random.split(key, 14)
    return {
        # encoder (gate order [r, z, n] along the 3H axis)
        "enc_emb": _uniform(ks[0], (vocab, emb_dim)),
        "enc_wi": _uniform(ks[1], (emb_dim, 3 * hid_dim)),
        "enc_wh": _uniform(ks[2], (hid_dim, 3 * hid_dim)),
        "enc_bi": _uniform(ks[3], (1, 3 * hid_dim)),
        "enc_bh": _uniform(ks[4], (1, 3 * hid_dim)),
        # decoder
        "dec_emb": _uniform(ks[5], (vocab, emb_dim)),
        "dec_wi": _uniform(ks[6], (emb_dim, 3 * hid_dim)),
        "dec_wh": _uniform(ks[7], (hid_dim, 3 * hid_dim)),
        "dec_bi": _uniform(ks[8], (1, 3 * hid_dim)),
        "dec_bh": _uniform(ks[9], (1, 3 * hid_dim)),
        # Luong concat + output projection
        "wc": _uniform(ks[10], (2 * hid_dim, hid_dim)),
        "bc": _uniform(ks[11], (1, hid_dim)),
        "wo": _uniform(ks[12], (hid_dim, vocab)),
        "bo": _uniform(ks[13], (1, vocab)),
    }


# ----------------------------------------------------------------------------
# Seq2seqWithAttn forward (training branch, predict=False) -> scalar NLL loss
# ----------------------------------------------------------------------------
@functools.partial(jax.jit, static_argnames=("bos_token", "pad_token"))
def _forward(params, input_batches, lengths_b1, target_tb, tf_mask, *,
             bos_token, pad_token):
    emb_seq = params["enc_emb"][input_batches]                # (S, B, E)
    enc_out, h_final = run_encoder(emb_seq, lengths_b1,
                                   params["enc_wi"], params["enc_wh"],
                                   params["enc_bi"], params["enc_bh"])
    enc_bsh = jnp.transpose(enc_out, (1, 0, 2))               # (B, S, H)

    tgt_tb1 = target_tb[..., None].astype(jnp.int32)          # (T, B, 1)
    return run_decoder_loss(tf_mask, tgt_tb1, h_final, enc_bsh, params,
                            bos_token, pad_token)


def seq2seq_with_attn_forward(params, input_batches, input_lengths,
                              target_batches, target_lengths,
                              teacher_forcing=0.5, basic_dict=None,
                              rng_key=None):
    max_target_length = int(max(target_lengths))
    tgt = target_batches[:max_target_length]
    if rng_key is None:
        rng_key = jax.random.PRNGKey(0)
    # per-step teacher-forcing coin flips, precomputed (replaces host-side
    # random.random() so the whole forward can be jitted)
    tf_mask = (jax.random.uniform(rng_key, (max_target_length,))
               < teacher_forcing).astype(jnp.int32)
    lengths_b1 = jnp.asarray(input_lengths, jnp.int32).reshape(-1, 1)
    return _forward(params, input_batches, lengths_b1, tgt, tf_mask,
                    bos_token=int(basic_dict["<bos>"]),
                    pad_token=int(basic_dict["<pad>"]))


# ----------------------------------------------------------------------------
if __name__ == "__main__":
    key = jax.random.PRNGKey(0)

    VOCAB, EMB, HID = 32, 16, 32
    SRC_LEN, BATCH, TGT_LEN = 8, 2, 6
    basic_dict = {"<pad>": 0, "<bos>": 1, "<eoc>": 2, "<unk>": 3}

    k_param, k_src, k_tgt, k_tf = jax.random.split(key, 4)
    params = init_params(k_param, VOCAB, EMB, HID)

    input_batches = jax.random.randint(k_src, (SRC_LEN, BATCH), 4, VOCAB).astype(jnp.int32)
    input_lengths = [SRC_LEN, SRC_LEN - 2]
    target_batches = jax.random.randint(k_tgt, (TGT_LEN, BATCH), 4, VOCAB).astype(jnp.int32)
    target_lengths = [TGT_LEN, TGT_LEN - 2]
    # pad out the tail of the shorter target sequence (exercises ignore_index)
    target_batches = target_batches.at[TGT_LEN - 2:, 1].set(basic_dict["<pad>"])

    loss = seq2seq_with_attn_forward(
        params, input_batches, input_lengths,
        target_batches, target_lengths,
        teacher_forcing=0.5, basic_dict=basic_dict, rng_key=k_tf,
    )
    jax.block_until_ready(loss)
    assert jnp.isfinite(loss)
    print("KERNEL_OK")
</pallas_src>

<mosaic_0001>
module attributes {stable_mosaic.version = 11 : i64} {
  func.func @_encoder_kernel(%arg0: i32, %arg1: memref<1x2x16xf32, #tpu.memory_space<vmem>>, %arg2: memref<2x1xi32, #tpu.memory_space<vmem>>, %arg3: memref<16x96xf32, #tpu.memory_space<vmem>>, %arg4: memref<32x96xf32, #tpu.memory_space<vmem>>, %arg5: memref<1x96xf32, #tpu.memory_space<vmem>>, %arg6: memref<1x96xf32, #tpu.memory_space<vmem>>, %arg7: memref<1x2x32xf32, #tpu.memory_space<vmem>>, %arg8: memref<2x32xf32, #tpu.memory_space<vmem>>, %arg9: memref<2x32xf32, #tpu.memory_space<vmem>>) attributes {dimension_semantics = [#tpu.dimension_semantics<arbitrary>], iteration_bounds = array<i64: 8>, scalar_prefetch = 0 : i64, scratch_operands = 1 : i64, tpu.core_type = #tpu.core_type<tc>, window_params = [{transform_indices = @transform_0, window_bounds = array<i64: 1, 2, 16>}, {pipeline_mode = #tpu.pipeline_mode<synchronous>, transform_indices = @transform_1, window_bounds = array<i64: 2, 1>}, {pipeline_mode = #tpu.pipeline_mode<synchronous>, transform_indices = @transform_2, window_bounds = array<i64: 16, 96>}, {pipeline_mode = #tpu.pipeline_mode<synchronous>, transform_indices = @transform_3, window_bounds = array<i64: 32, 96>}, {pipeline_mode = #tpu.pipeline_mode<synchronous>, transform_indices = @transform_4, window_bounds = array<i64: 1, 96>}, {pipeline_mode = #tpu.pipeline_mode<synchronous>, transform_indices = @transform_5, window_bounds = array<i64: 1, 96>}, {transform_indices = @transform_6, window_bounds = array<i64: 1, 2, 32>}, {pipeline_mode = #tpu.pipeline_mode<synchronous>, transform_indices = @transform_7, window_bounds = array<i64: 2, 32>}]} {
    %c0_i32 = arith.constant 0 : i32
    %0 = arith.cmpi eq, %arg0, %c0_i32 : i32
    %1 = arith.extui %0 : i1 to i32
    %c0_i32_0 = arith.constant 0 : i32
    %2 = arith.cmpi ne, %1, %c0_i32_0 : i32
    scf.if %2 {
      %cst_27 = arith.constant 0.000000e+00 : f32
      %57 = vector.broadcast %cst_27 : f32 to vector<2x32xf32>
      %c0_28 = arith.constant 0 : index
      %c0_29 = arith.constant 0 : index
      %58 = vector.load %arg9[%c0_28, %c0_29] : memref<2x32xf32, #tpu.memory_space<vmem>>, vector<2x32xf32>
      tpu.vector_store %arg9[%c0_28, %c0_29], %57 {strides = array<i32>} : memref<2x32xf32, #tpu.memory_space<vmem>>, vector<2x32xf32>,
    } else {
    }
    %c0 = arith.constant 0 : index
    %c0_1 = arith.constant 0 : index
    %c0_2 = arith.constant 0 : index
    %3 = vector.load %arg1[%c0, %c0_1, %c0_2] : memref<1x2x16xf32, #tpu.memory_space<vmem>>, vector<1x2x16xf32>
    %4 = vector.shape_cast %3 : vector<1x2x16xf32> to vector<2x16xf32>
    %c0_3 = arith.constant 0 : index
    %c0_4 = arith.constant 0 : index
    %5 = vector.load %arg9[%c0_3, %c0_4] : memref<2x32xf32, #tpu.memory_space<vmem>>, vector<2x32xf32>
    %c0_5 = arith.constant 0 : index
    %c0_6 = arith.constant 0 : index
    %6 = vector.load %arg3[%c0_5, %c0_6] : memref<16x96xf32, #tpu.memory_space<vmem>>, vector<16x96xf32>
    %cst = arith.constant dense<0.000000e+00> : vector<2x96xf32>
    %7 = tpu.matmul %4, %6, %cst {dimension_numbers = #tpu.dot_dimension_numbers<[1], [0], [0], [1], [0, 0, 1, 1], [], []>} : vector<2x16xf32>, vector<16x96xf32>, vector<2x96xf32> -> vector<2x96xf32>
    %c0_7 = arith.constant 0 : index
    %c0_8 = arith.constant 0 : index
    %8 = vector.load %arg5[%c0_7, %c0_8] : memref<1x96xf32, #tpu.memory_space<vmem>>, vector<1x96xf32>
    %9 = vector.broadcast %8 : vector<1x96xf32> to vector<2x96xf32>
    %10 = arith.addf %7, %9 : vector<2x96xf32>
    %c0_9 = arith.constant 0 : index
    %c0_10 = arith.constant 0 : index
    %11 = vector.load %arg4[%c0_9, %c0_10] : memref<32x96xf32, #tpu.memory_space<vmem>>, vector<32x96xf32>
    %cst_11 = arith.constant dense<0.000000e+00> : vector<2x96xf32>
    %12 = tpu.matmul %5, %11, %cst_11 {dimension_numbers = #tpu.dot_dimension_numbers<[1], [0], [0], [1], [0, 0, 1, 1], [], []>} : vector<2x32xf32>, vector<32x96xf32>, vector<2x96xf32> -> vector<2x96xf32>
    %c0_12 = arith.constant 0 : index
    %c0_13 = arith.constant 0 : index
    %13 = vector.load %arg6[%c0_12, %c0_13] : memref<1x96xf32, #tpu.memory_space<vmem>>, vector<1x96xf32>
    %14 = vector.broadcast %13 : vector<1x96xf32> to vector<2x96xf32>
    %15 = arith.addf %12, %14 : vector<2x96xf32>
    %16 = vector.extract_strided_slice %10 {offsets = [0, 0], sizes = [2, 32], strides = [1, 1]} : vector<2x96xf32> to vector<2x32xf32>
    %17 = vector.extract_strided_slice %15 {offsets = [0, 0], sizes = [2, 32], strides = [1, 1]} : vector<2x96xf32> to vector<2x32xf32>
    %18 = arith.addf %16, %17 : vector<2x32xf32>
    %19 = arith.negf %18 : vector<2x32xf32>
    %20 = math.exp %19 : vector<2x32xf32>
    %cst_14 = arith.constant 1.000000e+00 : f32
    %21 = vector.broadcast %cst_14 : f32 to vector<2x32xf32>
    %22 = arith.addf %21, %20 : vector<2x32xf32>
    %23 = arith.divf %21, %22 : vector<2x32xf32>
    %24 = vector.extract_strided_slice %10 {offsets = [0, 32], sizes = [2, 32], strides = [1, 1]} : vector<2x96xf32> to vector<2x32xf32>
    %25 = vector.extract_strided_slice %15 {offsets = [0, 32], sizes = [2, 32], strides = [1, 1]} : vector<2x96xf32> to vector<2x32xf32>
    %26 = arith.addf %24, %25 : vector<2x32xf32>
    %27 = arith.negf %26 : vector<2x32xf32>
    %28 = math.exp %27 : vector<2x32xf32>
    %cst_15 = arith.constant 1.000000e+00 : f32
    %29 = vector.broadcast %cst_15 : f32 to vector<2x32xf32>
    %30 = arith.addf %29, %28 : vector<2x32xf32>
    %31 = arith.divf %29, %30 : vector<2x32xf32>
    %32 = vector.extract_strided_slice %10 {offsets = [0, 64], sizes = [2, 32], strides = [1, 1]} : vector<2x96xf32> to vector<2x32xf32>
    %33 = vector.extract_strided_slice %15 {offsets = [0, 64], sizes = [2, 32], strides = [1, 1]} : vector<2x96xf32> to vector<2x32xf32>
    %34 = arith.mulf %23, %33 : vector<2x32xf32>
    %35 = arith.addf %32, %34 : vector<2x32xf32>
    %36 = math.tanh %35 : vector<2x32xf32>
    %cst_16 = arith.constant 1.000000e+00 : f32
    %37 = vector.broadcast %cst_16 : f32 to vector<2x32xf32>
    %38 = arith.subf %37, %31 : vector<2x32xf32>
    %39 = arith.mulf %38, %36 : vector<2x32xf32>
    %40 = arith.mulf %31, %5 : vector<2x32xf32>
    %41 = arith.addf %39, %40 : vector<2x32xf32>
    %c0_17 = arith.constant 0 : index
    %c0_18 = arith.constant 0 : index
    %42 = vector.load %arg2[%c0_17, %c0_18] : memref<2x1xi32, #tpu.memory_space<vmem>>, vector<2x1xi32>
    %43 = vector.broadcast %arg0 : i32 to vector<2x1xi32>
    %44 = arith.cmpi slt, %43, %42 : vector<2x1xi32>
    %45 = vector.shape_cast %44 : vector<2x1xi1> to vector<2x1xi1>
    %46 = vector.broadcast %45 : vector<2x1xi1> to vector<2x32xi1>
    %47 = arith.select %46, %41, %5 : vector<2x32xi1>, vector<2x32xf32>
    %c0_19 = arith.constant 0 : index
    %c0_20 = arith.constant 0 : index
    %48 = vector.load %arg9[%c0_19, %c0_20] : memref<2x32xf32, #tpu.memory_space<vmem>>, vector<2x32xf32>
    tpu.vector_store %arg9[%c0_19, %c0_20], %47 {strides = array<i32>} : memref<2x32xf32, #tpu.memory_space<vmem>>, vector<2x32xf32>,
    %cst_21 = arith.constant 0.000000e+00 : f32
    %49 = vector.shape_cast %44 : vector<2x1xi1> to vector<2x1xi1>
    %50 = vector.broadcast %49 : vector<2x1xi1> to vector<2x32xi1>
    %51 = vector.broadcast %cst_21 : f32 to vector<2x32xf32>
    %52 = arith.select %50, %41, %51 : vector<2x32xi1>, vector<2x32xf32>
    %c0_22 = arith.constant 0 : index
    %c0_23 = arith.constant 0 : index
    %c0_24 = arith.constant 0 : index
    %53 = vector.load %arg7[%c0_22, %c0_23, %c0_24] : memref<1x2x32xf32, #tpu.memory_space<vmem>>, vector<1x2x32xf32>
    %54 = vector.shape_cast %53 : vector<1x2x32xf32> to vector<2x32xf32>
    %55 = vector.shape_cast %52 : vector<2x32xf32> to vector<1x2x32xf32>
    tpu.vector_store %arg7[%c0_22, %c0_23, %c0_24], %55 {strides = array<i32>} : memref<1x2x32xf32, #tpu.memory_space<vmem>>, vector<1x2x32xf32>,
    %c0_25 = arith.constant 0 : index
    %c0_26 = arith.constant 0 : index
    %56 = vector.load %arg8[%c0_25, %c0_26] : memref<2x32xf32, #tpu.memory_space<vmem>>, vector<2x32xf32>
    tpu.vector_store %arg8[%c0_25, %c0_26], %47 {strides = array<i32>} : memref<2x32xf32, #tpu.memory_space<vmem>>, vector<2x32xf32>,
    return
  }
  func.func @transform_0(%arg0: i32) -> (i32, i32, i32) {
    %c0_i32 = arith.constant 0 : i32
    %c0_i32_0 = arith.constant 0 : i32
    %c0_i32_1 = arith.constant 0 : i32
    return %arg0, %c0_i32, %c0_i32_0 : i32, i32, i32
  }
  func.func @transform_1(%arg0: i32) -> (i32, i32) {
    %c0_i32 = arith.constant 0 : i32
    %c0_i32_0 = arith.constant 0 : i32
    %c0_i32_1 = arith.constant 0 : i32
    return %c0_i32, %c0_i32_0 : i32, i32
  }
  func.func @transform_2(%arg0: i32) -> (i32, i32) {
    %c0_i32 = arith.constant 0 : i32
    %c0_i32_0 = arith.constant 0 : i32
    %c0_i32_1 = arith.constant 0 : i32
    return %c0_i32, %c0_i32_0 : i32, i32
  }
  func.func @transform_3(%arg0: i32) -> (i32, i32) {
    %c0_i32 = arith.constant 0 : i32
    %c0_i32_0 = arith.constant 0 : i32
    %c0_i32_1 = arith.constant 0 : i32
    return %c0_i32, %c0_i32_0 : i32, i32
  }
  func.func @transform_4(%arg0: i32) -> (i32, i32) {
    %c0_i32 = arith.constant 0 : i32
    %c0_i32_0 = arith.constant 0 : i32
    %c0_i32_1 = arith.constant 0 : i32
    return %c0_i32, %c0_i32_0 : i32, i32
  }
  func.func @transform_5(%arg0: i32) -> (i32, i32) {
    %c0_i32 = arith.constant 0 : i32
    %c0_i32_0 = arith.constant 0 : i32
    %c0_i32_1 = arith.constant 0 : i32
    return %c0_i32, %c0_i32_0 : i32, i32
  }
  func.func @transform_6(%arg0: i32) -> (i32, i32, i32) {
    %c0_i32 = arith.constant 0 : i32
    %c0_i32_0 = arith.constant 0 : i32
    %c0_i32_1 = arith.constant 0 : i32
    return %arg0, %c0_i32, %c0_i32_0 : i32, i32, i32
  }
  func.func @transform_7(%arg0: i32) -> (i32, i32) {
    %c0_i32 = arith.constant 0 : i32
    %c0_i32_0 = arith.constant 0 : i32
    %c0_i32_1 = arith.constant 0 : i32
    return %c0_i32, %c0_i32_0 : i32, i32
  }
}

module attributes {stable_mosaic.version = 11 : i64} {
  func.func @_decoder_kernel(%arg0: i32, %arg1: memref<6xi32, #tpu.memory_space<smem>>, %arg2: memref<1x2x1xi32, #tpu.memory_space<vmem>>, %arg3: memref<2x32xf32, #tpu.memory_space<vmem>>, %arg4: memref<2x8x32xf32, #tpu.memory_space<vmem>>, %arg5: memref<32x16xf32, #tpu.memory_space<vmem>>, %arg6: memref<16x96xf32, #tpu.memory_space<vmem>>, %arg7: memref<32x96xf32, #tpu.memory_space<vmem>>, %arg8: memref<1x96xf32, #tpu.memory_space<vmem>>, %arg9: memref<1x96xf32, #tpu.memory_space<vmem>>, %arg10: memref<64x32xf32, #tpu.memory_space<vmem>>, %arg11: memref<1x32xf32, #tpu.memory_space<vmem>>, %arg12: memref<32x32xf32, #tpu.memory_space<vmem>>, %arg13: memref<1x32xf32, #tpu.memory_space<vmem>>, %arg14: memref<1x1xf32, #tpu.memory_space<vmem>>, %arg15: memref<2x32xf32, #tpu.memory_space<vmem>>, %arg16: memref<2x1xi32, #tpu.memory_space<vmem>>, %arg17: memref<1x1xf32, #tpu.memory_space<vmem>>, %arg18: memref<1x1xf32, #tpu.memory_space<vmem>>) attributes {dimension_semantics = [#tpu.dimension_semantics<arbitrary>], iteration_bounds = array<i64: 6>, scalar_prefetch = 1 : i64, scratch_operands = 4 : i64, tpu.core_type = #tpu.core_type<tc>, window_params = [{transform_indices = @transform_0, window_bounds = array<i64: 1, 2, 1>}, {pipeline_mode = #tpu.pipeline_mode<synchronous>, transform_indices = @transform_1, window_bounds = array<i64: 2, 32>}, {pipeline_mode = #tpu.pipeline_mode<synchronous>, transform_indices = @transform_2, window_bounds = array<i64: 2, 8, 32>}, {pipeline_mode = #tpu.pipeline_mode<synchronous>, transform_indices = @transform_3, window_bounds = array<i64: 32, 16>}, {pipeline_mode = #tpu.pipeline_mode<synchronous>, transform_indices = @transform_4, window_bounds = array<i64: 16, 96>}, {pipeline_mode = #tpu.pipeline_mode<synchronous>, transform_indices = @transform_5, window_bounds = array<i64: 32, 96>}, {pipeline_mode = #tpu.pipeline_mode<synchronous>, transform_indices = @transform_6, window_bounds = array<i64: 1, 96>}, {pipeline_mode = #tpu.pipeline_mode<synchronous>, transform_indices = @transform_7, window_bounds = array<i64: 1, 96>}, {pipeline_mode = #tpu.pipeline_mode<synchronous>, transform_indices = @transform_8, window_bounds = array<i64: 64, 32>}, {pipeline_mode = #tpu.pipeline_mode<synchronous>, transform_indices = @transform_9, window_bounds = array<i64: 1, 32>}, {pipeline_mode = #tpu.pipeline_mode<synchronous>, transform_indices = @transform_10, window_bounds = array<i64: 32, 32>}, {pipeline_mode = #tpu.pipeline_mode<synchronous>, transform_indices = @transform_11, window_bounds = array<i64: 1, 32>}, {pipeline_mode = #tpu.pipeline_mode<synchronous>, transform_indices = @transform_12, window_bounds = array<i64: 1, 1>}]} {
    %c0_i32 = arith.constant 0 : i32
    %0 = arith.cmpi eq, %arg0, %c0_i32 : i32
    %1 = arith.extui %0 : i1 to i32
    %c0_i32_0 = arith.constant 0 : i32
    %2 = arith.cmpi ne, %1, %c0_i32_0 : i32
    scf.if %2 {
      %c0_68 = arith.constant 0 : index
      %c0_69 = arith.constant 0 : index
      %133 = vector.load %arg3[%c0_68, %c0_69] : memref<2x32xf32, #tpu.memory_space<vmem>>, vector<2x32xf32>
      %c0_70 = arith.constant 0 : index
      %c0_71 = arith.constant 0 : index
      %134 = vector.load %arg15[%c0_70, %c0_71] : memref<2x32xf32, #tpu.memory_space<vmem>>, vector<2x32xf32>
      tpu.vector_store %arg15[%c0_70, %c0_71], %133 {strides = array<i32>} : memref<2x32xf32, #tpu.memory_space<vmem>>, vector<2x32xf32>,
      %c1_i32 = arith.constant 1 : i32
      %135 = vector.broadcast %c1_i32 : i32 to vector<2x1xi32>
      %c0_72 = arith.constant 0 : index
      %c0_73 = arith.constant 0 : index
      %136 = vector.load %arg16[%c0_72, %c0_73] : memref<2x1xi32, #tpu.memory_space<vmem>>, vector<2x1xi32>
      tpu.vector_store %arg16[%c0_72, %c0_73], %135 {strides = array<i32>} : memref<2x1xi32, #tpu.memory_space<vmem>>, vector<2x1xi32>,
      %cst_74 = arith.constant 0.000000e+00 : f32
      %137 = vector.broadcast %cst_74 : f32 to vector<1x1xf32>
      %c0_75 = arith.constant 0 : index
      %c0_76 = arith.constant 0 : index
      %138 = vector.load %arg17[%c0_75, %c0_76] : memref<1x1xf32, #tpu.memory_space<vmem>>, vector<1x1xf32>
      tpu.vector_store %arg17[%c0_75, %c0_76], %137 {strides = array<i32>} : memref<1x1xf32, #tpu.memory_space<vmem>>, vector<1x1xf32>,
      %cst_77 = arith.constant 0.000000e+00 : f32
      %139 = vector.broadcast %cst_77 : f32 to vector<1x1xf32>
      %c0_78 = arith.constant 0 : index
      %c0_79 = arith.constant 0 : index
      %140 = vector.load %arg18[%c0_78, %c0_79] : memref<1x1xf32, #tpu.memory_space<vmem>>, vector<1x1xf32>
      tpu.vector_store %arg18[%c0_78, %c0_79], %139 {strides = array<i32>} : memref<1x1xf32, #tpu.memory_space<vmem>>, vector<1x1xf32>,
    } else {
    }
    %c0 = arith.constant 0 : index
    %c0_1 = arith.constant 0 : index
    %3 = vector.load %arg16[%c0, %c0_1] : memref<2x1xi32, #tpu.memory_space<vmem>>, vector<2x1xi32>
    %4 = tpu.iota {dimensions = array<i32: 1>} : vector<2x32xi32>
    %5 = vector.broadcast %3 : vector<2x1xi32> to vector<2x32xi32>
    %6 = arith.cmpi eq, %4, %5 : vector<2x32xi32>
    %7 = arith.extui %6 : vector<2x32xi1> to vector<2x32xi32>
    %8 = arith.sitofp %7 : vector<2x32xi32> to vector<2x32xf32>
    %c0_2 = arith.constant 0 : index
    %c0_3 = arith.constant 0 : index
    %9 = vector.load %arg5[%c0_2, %c0_3] : memref<32x16xf32, #tpu.memory_space<vmem>>, vector<32x16xf32>
    %cst = arith.constant dense<0.000000e+00> : vector<2x16xf32>
    %10 = tpu.matmul %8, %9, %cst {dimension_numbers = #tpu.dot_dimension_numbers<[1], [0], [0], [1], [0, 0, 1, 1], [], []>} : vector<2x32xf32>, vector<32x16xf32>, vector<2x16xf32> -> vector<2x16xf32>
    %c0_4 = arith.constant 0 : index
    %c0_5 = arith.constant 0 : index
    %11 = vector.load %arg15[%c0_4, %c0_5] : memref<2x32xf32, #tpu.memory_space<vmem>>, vector<2x32xf32>
    %c0_6 = arith.constant 0 : index
    %c0_7 = arith.constant 0 : index
    %12 = vector.load %arg6[%c0_6, %c0_7] : memref<16x96xf32, #tpu.memory_space<vmem>>, vector<16x96xf32>
    %cst_8 = arith.constant dense<0.000000e+00> : vector<2x96xf32>
    %13 = tpu.matmul %10, %12, %cst_8 {dimension_numbers = #tpu.dot_dimension_numbers<[1], [0], [0], [1], [0, 0, 1, 1], [], []>} : vector<2x16xf32>, vector<16x96xf32>, vector<2x96xf32> -> vector<2x96xf32>
    %c0_9 = arith.constant 0 : index
    %c0_10 = arith.constant 0 : index
    %14 = vector.load %arg8[%c0_9, %c0_10] : memref<1x96xf32, #tpu.memory_space<vmem>>, vector<1x96xf32>
    %15 = vector.broadcast %14 : vector<1x96xf32> to vector<2x96xf32>
    %16 = arith.addf %13, %15 : vector<2x96xf32>
    %c0_11 = arith.constant 0 : index
    %c0_12 = arith.constant 0 : index
    %17 = vector.load %arg7[%c0_11, %c0_12] : memref<32x96xf32, #tpu.memory_space<vmem>>, vector<32x96xf32>
    %cst_13 = arith.constant dense<0.000000e+00> : vector<2x96xf32>
    %18 = tpu.matmul %11, %17, %cst_13 {dimension_numbers = #tpu.dot_dimension_numbers<[1], [0], [0], [1], [0, 0, 1, 1], [], []>} : vector<2x32xf32>, vector<32x96xf32>, vector<2x96xf32> -> vector<2x96xf32>
    %c0_14 = arith.constant 0 : index
    %c0_15 = arith.constant 0 : index
    %19 = vector.load %arg9[%c0_14, %c0_15] : memref<1x96xf32, #tpu.memory_space<vmem>>, vector<1x96xf32>
    %20 = vector.broadcast %19 : vector<1x96xf32> to vector<2x96xf32>
    %21 = arith.addf %18, %20 : vector<2x96xf32>
    %22 = vector.extract_strided_slice %16 {offsets = [0, 0], sizes = [2, 32], strides = [1, 1]} : vector<2x96xf32> to vector<2x32xf32>
    %23 = vector.extract_strided_slice %21 {offsets = [0, 0], sizes = [2, 32], strides = [1, 1]} : vector<2x96xf32> to vector<2x32xf32>
    %24 = arith.addf %22, %23 : vector<2x32xf32>
    %25 = arith.negf %24 : vector<2x32xf32>
    %26 = math.exp %25 : vector<2x32xf32>
    %cst_16 = arith.constant 1.000000e+00 : f32
    %27 = vector.broadcast %cst_16 : f32 to vector<2x32xf32>
    %28 = arith.addf %27, %26 : vector<2x32xf32>
    %29 = arith.divf %27, %28 : vector<2x32xf32>
    %30 = vector.extract_strided_slice %16 {offsets = [0, 32], sizes = [2, 32], strides = [1, 1]} : vector<2x96xf32> to vector<2x32xf32>
    %31 = vector.extract_strided_slice %21 {offsets = [0, 32], sizes = [2, 32], strides = [1, 1]} : vector<2x96xf32> to vector<2x32xf32>
    %32 = arith.addf %30, %31 : vector<2x32xf32>
    %33 = arith.negf %32 : vector<2x32xf32>
    %34 = math.exp %33 : vector<2x32xf32>
    %cst_17 = arith.constant 1.000000e+00 : f32
    %35 = vector.broadcast %cst_17 : f32 to vector<2x32xf32>
    %36 = arith.addf %35, %34 : vector<2x32xf32>
    %37 = arith.divf %35, %36 : vector<2x32xf32>
    %38 = vector.extract_strided_slice %16 {offsets = [0, 64], sizes = [2, 32], strides = [1, 1]} : vector<2x96xf32> to vector<2x32xf32>
    %39 = vector.extract_strided_slice %21 {offsets = [0, 64], sizes = [2, 32], strides = [1, 1]} : vector<2x96xf32> to vector<2x32xf32>
    %40 = arith.mulf %29, %39 : vector<2x32xf32>
    %41 = arith.addf %38, %40 : vector<2x32xf32>
    %42 = math.tanh %41 : vector<2x32xf32>
    %cst_18 = arith.constant 1.000000e+00 : f32
    %43 = vector.broadcast %cst_18 : f32 to vector<2x32xf32>
    %44 = arith.subf %43, %37 : vector<2x32xf32>
    %45 = arith.mulf %44, %42 : vector<2x32xf32>
    %46 = arith.mulf %37, %11 : vector<2x32xf32>
    %47 = arith.addf %45, %46 : vector<2x32xf32>
    %c0_19 = arith.constant 0 : index
    %c0_20 = arith.constant 0 : index
    %48 = vector.load %arg15[%c0_19, %c0_20] : memref<2x32xf32, #tpu.memory_space<vmem>>, vector<2x32xf32>
    tpu.vector_store %arg15[%c0_19, %c0_20], %47 {strides = array<i32>} : memref<2x32xf32, #tpu.memory_space<vmem>>, vector<2x32xf32>,
    %c0_21 = arith.constant 0 : index
    %c0_22 = arith.constant 0 : index
    %c0_23 = arith.constant 0 : index
    %49 = vector.load %arg4[%c0_21, %c0_22, %c0_23] : memref<2x8x32xf32, #tpu.memory_space<vmem>>, vector<2x8x32xf32>
    %50 = vector.shape_cast %47 : vector<2x32xf32> to vector<2x1x32xf32>
    "tpu.trace_start"() <{level = 10 : i32, message = "bqh,bsh->bqs"}> : () -> ()
    %cst_24 = arith.constant dense<0.000000e+00> : vector<2x1x8xf32>
    %51 = tpu.matmul %50, %49, %cst_24 {dimension_numbers = #tpu.dot_dimension_numbers<[2], [2], [1], [1], [0, 0, 0, 1, 1, 1], [0], [0]>} : vector<2x1x32xf32>, vector<2x8x32xf32>, vector<2x1x8xf32> -> vector<2x1x8xf32>
    "tpu.trace_stop"() : () -> ()
    %cst_25 = arith.constant dense<0xFF800000> : vector<2x1xf32>
    %52 = vector.multi_reduction <maximumf>, %51, %cst_25 [2] : vector<2x1x8xf32> to vector<2x1xf32>
    %53 = vector.shape_cast %52 : vector<2x1xf32> to vector<2x1x1xf32>
    %54 = vector.broadcast %53 : vector<2x1x1xf32> to vector<2x1x8xf32>
    %55 = arith.subf %51, %54 : vector<2x1x8xf32>
    %56 = math.exp %55 : vector<2x1x8xf32>
    %cst_26 = arith.constant dense<0.000000e+00> : vector<2x1xf32>
    %57 = vector.multi_reduction <add>, %56, %cst_26 [2] : vector<2x1x8xf32> to vector<2x1xf32>
    %58 = vector.shape_cast %57 : vector<2x1xf32> to vector<2x1x1xf32>
    %59 = tpu.reciprocal %58 {approx = true} : vector<2x1x1xf32> -> vector<2x1x1xf32>
    %60 = vector.broadcast %59 : vector<2x1x1xf32> to vector<2x1x8xf32>
    %61 = arith.mulf %56, %60 : vector<2x1x8xf32>
    "tpu.trace_start"() <{level = 10 : i32, message = "bqs,bsh->bqh"}> : () -> ()
    %cst_27 = arith.constant dense<0.000000e+00> : vector<2x1x32xf32>
    %62 = tpu.matmul %61, %49, %cst_27 {dimension_numbers = #tpu.dot_dimension_numbers<[2], [1], [1], [2], [0, 0, 0, 1, 1, 2], [0], [0]>} : vector<2x1x8xf32>, vector<2x8x32xf32>, vector<2x1x32xf32> -> vector<2x1x32xf32>
    "tpu.trace_stop"() : () -> ()
    %63 = vector.shape_cast %62 : vector<2x1x32xf32> to vector<2x32xf32>
    %64 = tpu.concatenate %47, %63 in 1 : vector<2x32xf32>, vector<2x32xf32> -> vector<2x64xf32>
    %c0_28 = arith.constant 0 : index
    %c0_29 = arith.constant 0 : index
    %65 = vector.load %arg10[%c0_28, %c0_29] : memref<64x32xf32, #tpu.memory_space<vmem>>, vector<64x32xf32>
    %cst_30 = arith.constant dense<0.000000e+00> : vector<2x32xf32>
    %66 = tpu.matmul %64, %65, %cst_30 {dimension_numbers = #tpu.dot_dimension_numbers<[1], [0], [0], [1], [0, 0, 1, 1], [], []>} : vector<2x64xf32>, vector<64x32xf32>, vector<2x32xf32> -> vector<2x32xf32>
    %c0_31 = arith.constant 0 : index
    %c0_32 = arith.constant 0 : index
    %67 = vector.load %arg11[%c0_31, %c0_32] : memref<1x32xf32, #tpu.memory_space<vmem>>, vector<1x32xf32>
    %68 = vector.broadcast %67 : vector<1x32xf32> to vector<2x32xf32>
    %69 = arith.addf %66, %68 : vector<2x32xf32>
    %70 = math.tanh %69 : vector<2x32xf32>
    %c0_33 = arith.constant 0 : index
    %c0_34 = arith.constant 0 : index
    %71 = vector.load %arg12[%c0_33, %c0_34] : memref<32x32xf32, #tpu.memory_space<vmem>>, vector<32x32xf32>
    %cst_35 = arith.constant dense<0.000000e+00> : vector<2x32xf32>
    %72 = tpu.matmul %70, %71, %cst_35 {dimension_numbers = #tpu.dot_dimension_numbers<[1], [0], [0], [1], [0, 0, 1, 1], [], []>} : vector<2x32xf32>, vector<32x32xf32>, vector<2x32xf32> -> vector<2x32xf32>
    %c0_36 = arith.constant 0 : index
    %c0_37 = arith.constant 0 : index
    %73 = vector.load %arg13[%c0_36, %c0_37] : memref<1x32xf32, #tpu.memory_space<vmem>>, vector<1x32xf32>
    %74 = vector.broadcast %73 : vector<1x32xf32> to vector<2x32xf32>
    %75 = arith.addf %72, %74 : vector<2x32xf32>
    %cst_38 = arith.constant dense<0xFF800000> : vector<2xf32>
    %76 = vector.multi_reduction <maximumf>, %75, %cst_38 [1] : vector<2x32xf32> to vector<2xf32>
    %77 = vector.shape_cast %76 : vector<2xf32> to vector<2x1xf32>
    %78 = vector.broadcast %77 : vector<2x1xf32> to vector<2x32xf32>
    %79 = arith.subf %75, %78 : vector<2x32xf32>
    %80 = math.exp %79 : vector<2x32xf32>
    %cst_39 = arith.constant dense<0.000000e+00> : vector<2xf32>
    %81 = vector.multi_reduction <add>, %80, %cst_39 [1] : vector<2x32xf32> to vector<2xf32>
    %82 = vector.shape_cast %81 : vector<2xf32> to vector<2x1xf32>
    %83 = math.log %82 : vector<2x1xf32>
    %84 = arith.addf %77, %83 : vector<2x1xf32>
    %c0_40 = arith.constant 0 : index
    %c0_41 = arith.constant 0 : index
    %c0_42 = arith.constant 0 : index
    %85 = vector.load %arg2[%c0_40, %c0_41, %c0_42] : memref<1x2x1xi32, #tpu.memory_space<vmem>>, vector<1x2x1xi32>
    %86 = vector.shape_cast %85 : vector<1x2x1xi32> to vector<2x1xi32>
    %87 = vector.broadcast %86 : vector<2x1xi32> to vector<2x32xi32>
    %88 = arith.cmpi eq, %4, %87 : vector<2x32xi32>
    %cst_43 = arith.constant 0.000000e+00 : f32
    %89 = vector.broadcast %cst_43 : f32 to vector<2x32xf32>
    %90 = arith.select %88, %75, %89 : vector<2x32xi1>, vector<2x32xf32>
    %cst_44 = arith.constant dense<0.000000e+00> : vector<2xf32>
    %91 = vector.multi_reduction <add>, %90, %cst_44 [1] : vector<2x32xf32> to vector<2xf32>
    %92 = vector.shape_cast %91 : vector<2xf32> to vector<2x1xf32>
    %93 = arith.subf %92, %84 : vector<2x1xf32>
    %c0_i32_45 = arith.constant 0 : i32
    %94 = vector.broadcast %c0_i32_45 : i32 to vector<2x1xi32>
    %95 = arith.cmpi ne, %86, %94 : vector<2x1xi32>
    %96 = arith.extui %95 : vector<2x1xi1> to vector<2x1xi32>
    %97 = arith.sitofp %96 : vector<2x1xi32> to vector<2x1xf32>
    %c0_46 = arith.constant 0 : index
    %c0_47 = arith.constant 0 : index
    %98 = vector.load %arg17[%c0_46, %c0_47] : memref<1x1xf32, #tpu.memory_space<vmem>>, vector<1x1xf32>
    %99 = arith.mulf %93, %97 : vector<2x1xf32>
    %100 = vector.shape_cast %99 : vector<2x1xf32> to vector<1x2x1xf32>
    %cst_48 = arith.constant dense<0.000000e+00> : vector<1xf32>
    %101 = vector.multi_reduction <add>, %100, %cst_48 [1, 2] : vector<1x2x1xf32> to vector<1xf32>
    %102 = vector.shape_cast %101 : vector<1xf32> to vector<1x1x1xf32>
    %103 = vector.extract %102[0, 0, 0] : f32 from vector<1x1x1xf32>
    %cst_49 = arith.constant 0.000000e+00 : f32
    %104 = arith.subf %cst_49, %103 : f32
    %105 = vector.broadcast %104 : f32 to vector<1x1xf32>
    %106 = arith.addf %98, %105 : vector<1x1xf32>
    %c0_50 = arith.constant 0 : index
    %c0_51 = arith.constant 0 : index
    %107 = vector.load %arg17[%c0_50, %c0_51] : memref<1x1xf32, #tpu.memory_space<vmem>>, vector<1x1xf32>
    tpu.vector_store %arg17[%c0_50, %c0_51], %106 {strides = array<i32>} : memref<1x1xf32, #tpu.memory_space<vmem>>, vector<1x1xf32>,
    %c0_52 = arith.constant 0 : index
    %c0_53 = arith.constant 0 : index
    %108 = vector.load %arg18[%c0_52, %c0_53] : memref<1x1xf32, #tpu.memory_space<vmem>>, vector<1x1xf32>
    %109 = vector.shape_cast %97 : vector<2x1xf32> to vector<1x2x1xf32>
    %cst_54 = arith.constant dense<0.000000e+00> : vector<1xf32>
    %110 = vector.multi_reduction <add>, %109, %cst_54 [1, 2] : vector<1x2x1xf32> to vector<1xf32>
    %111 = vector.shape_cast %110 : vector<1xf32> to vector<1x1x1xf32>
    %112 = vector.extract %111[0, 0, 0] : f32 from vector<1x1x1xf32>
    %113 = vector.broadcast %112 : f32 to vector<1x1xf32>
    %114 = arith.addf %108, %113 : vector<1x1xf32>
    %c0_55 = arith.constant 0 : index
    %c0_56 = arith.constant 0 : index
    %115 = vector.load %arg18[%c0_55, %c0_56] : memref<1x1xf32, #tpu.memory_space<vmem>>, vector<1x1xf32>
    tpu.vector_store %arg18[%c0_55, %c0_56], %114 {strides = array<i32>} : memref<1x1xf32, #tpu.memory_space<vmem>>, vector<1x1xf32>,
    %c0_57 = arith.constant 0 : index
    %c0_58 = arith.constant 0 : index
    %116 = vector.load %arg17[%c0_57, %c0_58] : memref<1x1xf32, #tpu.memory_space<vmem>>, vector<1x1xf32>
    %c0_59 = arith.constant 0 : index
    %c0_60 = arith.constant 0 : index
    %117 = vector.load %arg18[%c0_59, %c0_60] : memref<1x1xf32, #tpu.memory_space<vmem>>, vector<1x1xf32>
    %cst_61 = arith.constant 1.000000e+00 : f32
    %118 = vector.broadcast %cst_61 : f32 to vector<1x1xf32>
    %119 = arith.maximumf %117, %118 : vector<1x1xf32>
    %120 = arith.divf %116, %119 : vector<1x1xf32>
    %c0_62 = arith.constant 0 : index
    %c0_63 = arith.constant 0 : index
    %121 = vector.load %arg14[%c0_62, %c0_63] : memref<1x1xf32, #tpu.memory_space<vmem>>, vector<1x1xf32>
    tpu.vector_store %arg14[%c0_62, %c0_63], %120 {strides = array<i32>} : memref<1x1xf32, #tpu.memory_space<vmem>>, vector<1x1xf32>,
    %122 = vector.broadcast %77 : vector<2x1xf32> to vector<2x32xf32>
    %123 = arith.cmpf oeq, %75, %122 : vector<2x32xf32>
    %c32_i32 = arith.constant 32 : i32
    %124 = vector.broadcast %c32_i32 : i32 to vector<2x32xi32>
    %125 = arith.select %123, %4, %124 : vector<2x32xi1>, vector<2x32xi32>
    %cst_64 = arith.constant dense<2147483647> : vector<2xi32>
    %126 = vector.multi_reduction <minsi>, %125, %cst_64 [1] : vector<2x32xi32> to vector<2xi32>
    %127 = vector.shape_cast %126 : vector<2xi32> to vector<2x1xi32>
    %128 = arith.index_cast %arg0 : i32 to index
    %129 = memref.load %arg1[%128] : memref<6xi32, #tpu.memory_space<smem>>
    %c0_i32_65 = arith.constant 0 : i32
    %130 = arith.cmpi sgt, %129, %c0_i32_65 : i32
    %131 = arith.select %130, %86, %127 : vector<2x1xi32>
    %c0_66 = arith.constant 0 : index
    %c0_67 = arith.constant 0 : index
    %132 = vector.load %arg16[%c0_66, %c0_67] : memref<2x1xi32, #tpu.memory_space<vmem>>, vector<2x1xi32>
    tpu.vector_store %arg16[%c0_66, %c0_67], %131 {strides = array<i32>} : memref<2x1xi32, #tpu.memory_space<vmem>>, vector<2x1xi32>,
    return
  }
  func.func @transform_0(%arg0: i32, %arg1: memref<6xi32, #tpu.memory_space<smem>>) -> (i32, i32, i32) {
    %c0_i32 = arith.constant 0 : i32
    %c0_i32_0 = arith.constant 0 : i32
    %c0_i32_1 = arith.constant 0 : i32
    return %arg0, %c0_i32, %c0_i32_0 : i32, i32, i32
  }
  func.func @transform_1(%arg0: i32, %arg1: memref<6xi32, #tpu.memory_space<smem>>) -> (i32, i32) {
    %c0_i32 = arith.constant 0 : i32
    %c0_i32_0 = arith.constant 0 : i32
    %c0_i32_1 = arith.constant 0 : i32
    return %c0_i32, %c0_i32_0 : i32, i32
  }
  func.func @transform_2(%arg0: i32, %arg1: memref<6xi32, #tpu.memory_space<smem>>) -> (i32, i32, i32) {
    %c0_i32 = arith.constant 0 : i32
    %c0_i32_0 = arith.constant 0 : i32
    %c0_i32_1 = arith.constant 0 : i32
    %c0_i32_2 = arith.constant 0 : i32
    return %c0_i32, %c0_i32_0, %c0_i32_1 : i32, i32, i32
  }
  func.func @transform_3(%arg0: i32, %arg1: memref<6xi32, #tpu.memory_space<smem>>) -> (i32, i32) {
    %c0_i32 = arith.constant 0 : i32
    %c0_i32_0 = arith.constant 0 : i32
    %c0_i32_1 = arith.constant 0 : i32
    return %c0_i32, %c0_i32_0 : i32, i32
  }
  func.func @transform_4(%arg0: i32, %arg1: memref<6xi32, #tpu.memory_space<smem>>) -> (i32, i32) {
    %c0_i32 = arith.constant 0 : i32
    %c0_i32_0 = arith.constant 0 : i32
    %c0_i32_1 = arith.constant 0 : i32
    return %c0_i32, %c0_i32_0 : i32, i32
  }
  func.func @transform_5(%arg0: i32, %arg1: memref<6xi32, #tpu.memory_space<smem>>) -> (i32, i32) {
    %c0_i32 = arith.constant 0 : i32
    %c0_i32_0 = arith.constant 0 : i32
    %c0_i32_1 = arith.constant 0 : i32
    return %c0_i32, %c0_i32_0 : i32, i32
  }
  func.func @transform_6(%arg0: i32, %arg1: memref<6xi32, #tpu.memory_space<smem>>) -> (i32, i32) {
    %c0_i32 = arith.constant 0 : i32
    %c0_i32_0 = arith.constant 0 : i32
    %c0_i32_1 = arith.constant 0 : i32
    return %c0_i32, %c0_i32_0 : i32, i32
  }
  func.func @transform_7(%arg0: i32, %arg1: memref<6xi32, #tpu.memory_space<smem>>) -> (i32, i32) {
    %c0_i32 = arith.constant 0 : i32
    %c0_i32_0 = arith.constant 0 : i32
    %c0_i32_1 = arith.constant 0 : i32
    return %c0_i32, %c0_i32_0 : i32, i32
  }
  func.func @transform_8(%arg0: i32, %arg1: memref<6xi32, #tpu.memory_space<smem>>) -> (i32, i32) {
    %c0_i32 = arith.constant 0 : i32
    %c0_i32_0 = arith.constant 0 : i32
    %c0_i32_1 = arith.constant 0 : i32
    return %c0_i32, %c0_i32_0 : i32, i32
  }
  func.func @transform_9(%arg0: i32, %arg1: memref<6xi32, #tpu.memory_space<smem>>) -> (i32, i32) {
    %c0_i32 = arith.constant 0 : i32
    %c0_i32_0 = arith.constant 0 : i32
    %c0_i32_1 = arith.constant 0 : i32
    return %c0_i32, %c0_i32_0 : i32, i32
  }
  func.func @transform_10(%arg0: i32, %arg1: memref<6xi32, #tpu.memory_space<smem>>) -> (i32, i32) {
    %c0_i32 = arith.constant 0 : i32
    %c0_i32_0 = arith.constant 0 : i32
    %c0_i32_1 = arith.constant 0 : i32
    return %c0_i32, %c0_i32_0 : i32, i32
  }
  func.func @transform_11(%arg0: i32, %arg1: memref<6xi32, #tpu.memory_space<smem>>) -> (i32, i32) {
    %c0_i32 = arith.constant 0 : i32
    %c0_i32_0 = arith.constant 0 : i32
    %c0_i32_1 = arith.constant 0 : i32
    return %c0_i32, %c0_i32_0 : i32, i32
  }
  func.func @transform_12(%arg0: i32, %arg1: memref<6xi32, #tpu.memory_space<smem>>) -> (i32, i32) {
    %c0_i32 = arith.constant 0 : i32
    %c0_i32_0 = arith.constant 0 : i32
    %c0_i32_1 = arith.constant 0 : i32
    return %c0_i32, %c0_i32_0 : i32, i32
  }
}

</mosaic_0001>

<bundles_post_ra>
// kernel: _forward.2
= control target key start
LH: loop header
LB: loop body
LE: loop exit
PB: predicated region body
PF: predicated region fallthrough
CT: control target
= control target key end

     0   :  { %s688_s24 = smov 0   ;;  %s744_s0 = inlined_call_operand.vmem [shape: f32[8,2,16], index: 0, kind: input, shape index: {}]   ;;  %s745_s1 = inlined_call_operand.vmem [shape: s32[2,1], index: 1, kind: input, shape index: {}]   ;;  %s746_s2 = inlined_call_operand.vmem [shape: f32[16,96], index: 2, kind: input, shape index: {}]   ;;  %s747_s3 = inlined_call_operand.vmem [shape: f32[32,96], index: 3, kind: input, shape index: {}]   ;;  %s748_s4 = inlined_call_operand.vmem [shape: f32[1,96], index: 4, kind: input, shape index: {}]   ;;  %s749_s5 = inlined_call_operand.vmem [shape: f32[1,96], index: 5, kind: input, shape index: {}]   ;;  %s750_s6 = inlined_call_operand.vmem [shape: f32[8,2,32], index: 6, kind: output, shape index: {0}]   ;;  %s751_s7 = inlined_call_operand.vmem [shape: f32[2,32], index: 7, kind: output, shape index: {1}]  }
   0x1 LB: > { %s694_s25 = sadd.s32 4294967295, %s638_s24   ;;  %p562_p0 = scmp.ge.s32.totalorder %s638_s24, 1  ;;  %s638_s24 = sphi %s688_s24, %s18_s24  }
   0x2   : > { %p234_p1 = scmp.lt.s32.totalorder %s638_s24, 9 }
   0x4   : > { %p235_p2 = pnand %p562_p0, %p234_p1 }
   0x5   : > { %p264_p3 = scmp.lt.s32.totalorder (!%p235_p2), %s694_s25, 7  ;;  %p565_p4 = scmp.ne.s32.totalorder (!%p235_p2), %s694_s25, 0 }
   0x6   : > { %238 = sbr.rel (%p235_p2) target bundleno = 727 (0x2d7), region = 44 }
   0xd   : > { %s265_s26 = scalar_select %p264_p3, %s694_s25, 7 }
   0xe   : > { %275 = sbr.rel (%p565_p4) target bundleno = 21 (0x15), region = 48  ;;  %vm276_vm0 = vcmask (!%p565_p4), 254976   ;;  %v640_v0 = vmov (!%p565_p4), 0.0  }
   0xf   : > { %s563_s27 = sshll.u32 %s265_s26, 1  ;;  %277 = vst.msk [vmem:[#allocation2] sm:$0x3] (!%p565_p4), %vm276_vm0, %v640_v0 }
  0x10   : > { %s267_s30 = scalar_lea.vmem %s744_s0, %s563_s27  ;;  %s706_s10 = scalar_lea.vmem %s750_s6, %s563_s27 }
  0x15 PF: > { %v363_v1 = vld [vmem:[%s747_s3] sm:$0xff]  ;;  %v364_v2 = vld [vmem:[%s747_s3 + $0x8] sm:$0xff]  ;;  %v641_v4 = vmov 0.0|0.0   ;;  %v365_v7 = vld [vmem:[%s747_s3 + $0x10] sm:$0xff]  ;;  %vm642_vm1 = vmmov 0   ;;  %v643_v10 = vmov 0.0   ;;  %v478_v15 = vstv %s694_s25 }
  0x16   : > { %v280_v3 = vld [vmem:[%s746_s2] sm:$0xff]  ;;  %602 = vmatprep.subr.bf16.mxu1 %v641_v4  ;;  %v603_v5 = vpack.c.bf16 %v364_v2, %v363_v1  ;;  %599 = vmatprep.subr.bf16.mxu0 %v641_v4  ;;  %v281_v6 = vld [vmem:[%s746_s2 + $0x8] sm:$0xff]  ;;  %v366_v8 = vld [vmem:[%s747_s3 + $0x18] sm:$0xff]  ;;  %vm289_vm2 = vcmask 130048   ;;  %vm374_vm3 = vcmask 261120   ;;  %v644_v17 = vmov 0  }
  0x17   : > { %v600_v9 = vpack.c.bf16 %v281_v6, %v280_v3  ;;  %585 = vmatprep.mubr.msk.f32.mxu0 %vm642_vm1, %v643_v10  ;;  %596 = vmatprep.mubr.msk.f32.mxu1 %vm642_vm1, %v643_v10  ;;  %v606_v11 = vpack.c.bf16 %v366_v8, %v365_v7  ;;  %v278_v12 = vld [vmem:[%s267_s30] sm:$0x3]  ;;  %s645_s29 = smov 64   ;;  %s646_s25 = smov 32   ;;  %vm490_vm6 = vcmask 254976  }
  0x18   : > { %604 = vmatpush3.bf16.msra.mxu1 %v603_v5  ;;  %v279_v13 = vld [vmem:[#allocation2] sm:$0x3]  ;;  %624 = vset.pattern.permute.xlu1 %v644_v17  ;;  %s647_s9 = smov 96  }
  0x19   : > { %605 = vmatprep.subr.bf16.mxu1 %v641_v4  ;;  %601 = vmatpush3.bf16.msra.mxu0 %v600_v9  ;;  %v477_v14 = vld [vmem:[%s745_s1] sm:$0x3] }
  0x1a   : > { %vm479_vm4 = vcmp.lt.s32.totalorder %v478_v15, %v477_v14  ;;  %625 = vset.pattern.permute.xlu0 %v644_v17  ;;  %v568_v18 = vld [vmem:[%s749_s5] ss:$0 sm:$0xff] }
  0x1b   : > { %v480_v20 = vsel %vm479_vm4, 1, %v644_v17  ;;  %v566_v24 = vld [vmem:[%s748_s4] ss:$0 sm:$0xff] }
  0x1c   : > { %607 = vmatpush3.bf16.msra.mxu1 %v606_v11  ;;  %586 = vmatmul.mubr.msk.f32.vlgmr.msra.gmra.mrb[0].mxu0 %vm289_vm2, %v278_v12 }
  0x1d   : > { %482 = vperm.xlu1 %624, %v480_v20  }
  0x1f   : > { %597 = vmatmul.mubr.msk.f32.vlgmr.msra.gmra.mrb[0].mxu1 %vm374_vm3, %v279_v13 }
  0x9c   : > { %v483_v36 = vpop.permute.xlu1 %482 }
  0x9d   : > { %vm484_vm5 = vcmp.eq.s32.totalorder %v483_v36, 1 }
  0xef   : > { %v359_v16 = vpop.f32.mrb[0].mxu0 }
  0xf0   : > { %v587_v19 = vpop.f32.mrb[1].mxu0  ;;  %v360_v25 = vadd.f32 %v566_v24, %v359_v16 }
  0xf2   : > { %v444_v21 = vpop.f32.mrb[0].mxu1 }
  0xf3   : > { %v445_v22 = vadd.f32 %v568_v18, %v444_v21  ;;  %v598_v23 = vpop.f32.mrb[1].mxu1 }
  0xf5   : > { %456 = vrot.lane.b32.xlu0 %v445_v22, %s645_s29  ;;  %v448_v26 = vadd.f32 %v445_v22, %v360_v25 }
  0xf7   : > { %v570_v27 = vmul.f32 -1.442695, %v448_v26 }
  0xf9   : > { %626 = vpow2.f32 %v570_v27 }
 0x103   : > { %v627_v28 = vpop.eup %626 }
 0x104   : > { %v452_v29 = vadd.f32 1.0, %v627_v28 }
 0x106   : > { %628 = vrcp.f32 %v452_v29 }
 0x110   : > { %v629_v30 = vpop.eup %628 }
 0x111   : > { %v466_v38 = vsub.f32 1.0, %v629_v30 }
 0x167   : > { %v457_v31 = vpop.permute.xlu0 %456 }
 0x168   : > { %v459_v32 = vmul.f32 %v629_v30, %v457_v31 }
 0x16a   : > { %461 = vrot.lane.b32.xlu0 %v459_v32, %s645_s29 }
 0x16e   : > { %472 = vrot.lane.b32.xlu0 %v279_v13, %s646_s25 }
 0x1dc   : > { %v462_v33 = vpop.permute.xlu0 %461 }
 0x1dd   : > { %v464_v34 = vadd.f32 %v462_v33, %v360_v25 }
 0x1df   : > { %630 = vtanh.f32 %v464_v34 }
 0x1e0   : > { %v473_v37 = vpop.permute.xlu0 %472 }
 0x1e1   : > { %v475_v40 = vmul.f32 %v629_v30, %v473_v37 }
 0x1e9   : > { %v631_v35 = vpop.eup %630 }
 0x1ea   : > { %468 = vrot.lane.b32.xlu1 %v631_v35, %s647_s9 }
 0x25c   : > { %v469_v39 = vpop.permute.xlu1 %468 }
 0x25d   : > { %v471_v41 = vmul.f32 %v469_v39, %v466_v38 }
 0x25f   : > { %v476_v42 = vadd.f32 %v475_v40, %v471_v41 }
 0x261   : > { %v492_v43 = vsel %vm484_vm5, %v476_v42, 0.0  ;;  %v485_v44 = vsel %vm484_vm5, %v476_v42, %v473_v37 }
 0x262   : > { %494 = vrot.lane.b32.xlu0 %v492_v43, %s647_s9  ;;  %487 = vrot.lane.b32.xlu1 %v485_v44, %s647_s9 }
 0x2d4   : > { %v495_v45 = vpop.permute.xlu0 %494  ;;  %v488_v46 = vpop.permute.xlu1 %487 }
 0x2d5   : > { %497 = vst.msk [vmem:[%s706_s10] sm:$0x3] %vm490_vm6, %v495_v45  ;;  %491 = vst.msk [vmem:[#allocation2] sm:$0x3] %vm490_vm6, %v488_v46 }
 0x2d6   : > { %498 = vst.msk [vmem:[%s751_s7] sm:$0x3] %vm490_vm6, %v488_v46 }
 0x2d7 PF: > { %s18_s24 = sadd.s32 1, %s638_s24  }
 0x2d8   : > { %p15_p5 = scmp.ge.s32.totalorder %s18_s24, 10  }
 0x2da   :  { %17 = sbr.rel (!%p15_p5) target bundleno = 1 (0x1), region = 86 }

// kernel: _forward.3
= control target key start
LH: loop header
LB: loop body
LE: loop exit
PB: predicated region body
PF: predicated region fallthrough
CT: control target
= control target key end

     0   :  { %s1950_s0 = inlined_call_operand.vmem [shape: s32[6], index: 0, kind: input, shape index: {}]   ;;  %s1951_s1 = inlined_call_operand.vmem [shape: s32[6,2,1], index: 1, kind: input, shape index: {}]   ;;  %s1952_s2 = inlined_call_operand.vmem [shape: f32[2,32], index: 2, kind: input, shape index: {}]   ;;  %s1953_s3 = inlined_call_operand.vmem [shape: f32[2,8,32], index: 3, kind: input, shape index: {}]   ;;  %s1954_s4 = inlined_call_operand.vmem [shape: f32[32,16], index: 4, kind: input, shape index: {}]   ;;  %s1955_s5 = inlined_call_operand.vmem [shape: f32[16,96], index: 5, kind: input, shape index: {}]   ;;  %s1956_s6 = inlined_call_operand.vmem [shape: f32[32,96], index: 6, kind: input, shape index: {}]   ;;  %s1957_s7 = inlined_call_operand.vmem [shape: f32[1,96], index: 7, kind: input, shape index: {}]   ;;  %s1958_s8 = inlined_call_operand.vmem [shape: f32[1,96], index: 8, kind: input, shape index: {}]   ;;  %s1959_s9 = inlined_call_operand.vmem [shape: f32[64,32], index: 9, kind: input, shape index: {}]   ;;  %s1960_s10 = inlined_call_operand.vmem [shape: f32[1,32], index: 10, kind: input, shape index: {}]   ;;  %s1961_s11 = inlined_call_operand.vmem [shape: f32[32,32], index: 11, kind: input, shape index: {}]   ;;  %s1962_s12 = inlined_call_operand.vmem [shape: f32[1,32], index: 12, kind: input, shape index: {}]   ;;  %s1963_s13 = inlined_call_operand.hbm [shape: f32[1,1], index: 13, kind: output, shape index: {}]  }
   0x1   :  { %s18_s27 = sshll.u32 %s1950_s0, 4  ;;  %s19_s27 = int_to_ptr.vmem [resolvable:$true] %s18_s27 }
   0x2   :  { %s1606_s28 = scalar_lea.vmem %s19_s27, 16  ;;  %p1611_p1 = scmp.lt.s32.totalorder %s19_s27, %s19_s27 }
   0x3   :  { %p1607_p0 = scmp.ne.s32.totalorder %s19_s27, %s1606_s28  ;;  %p1612_p2 = scmp.lt.s32.totalorder %s1606_s28, %s1606_s28 }
   0x5   :  { %p1613_p3 = por %p1612_p2, %p1611_p1 }
   0x7   :  { %p1614_p4 = pnand %p1613_p3, %p1607_p0 }
   0x9   :  { %1617 = shalt.err (!%p1614_p4)  }
   0xa   :  { %s1658_s29 = smov [#allocation7]  }
   0xb   :  { %21 = dma.vmem_to_smem %s19_s27, 16, %s1658_s29, [#allocation6] }
   0xc   :  { %1648 = dma.done.wait [#allocation6], 16 }
   0xd   :  { %1649 = vsyncadd [#allocation6], 4294967280 }
   0xe   :  { %23 = sfence }
   0xf   :  { %24 = vsyncpa [#allocation9], 0  ;;  %s1743_s30 = smov 0  }
  0x10 LB: > { %s1749_s0 = sadd.s32 4294967295, %s1656_s30   ;;  %p1381_p5 = scmp.ge.s32.totalorder %s1656_s30, 1  ;;  %s1656_s30 = sphi %s1743_s30, %s30_s30  }
  0x11   : > { %p364_p6 = scmp.lt.s32.totalorder %s1656_s30, 7 }
  0x13   : > { %p365_p7 = pnand %p1381_p5, %p364_p6 }
  0x14   : > { %p400_p8 = scmp.lt.s32.totalorder (!%p365_p7), %s1749_s0, 5  ;;  %p1383_p9 = scmp.ne.s32.totalorder (!%p365_p7), %s1749_s0, 0 }
  0x15   : > { %368 = sbr.rel (%p365_p7) target bundleno = 3007 (0xbbf), region = 68 }
  0x1c   : > { %s401_s14 = scalar_select %p400_p8, %s1749_s0, 5 }
  0x1d   : > { %407 = sbr.rel (%p1383_p9) target bundleno = 36 (0x24), region = 72  ;;  %v408_v0 = vld [vmem:[%s1952_s2] sm:$0x3] (!%p1383_p9)  ;;  %vm409_vm0 = vcmask (!%p1383_p9), 254976   ;;  %vm411_vm1 = vcmask (!%p1383_p9), 1024   ;;  %vm413_vm2 = vcmask (!%p1383_p9), 0  }
  0x1e   : > { %s1382_s15 = sshll.u32 %s401_s14, 1  ;;  %410 = vst.msk [vmem:[#allocation2] sm:$0x3] (!%p1383_p9), %vm409_vm0, %v408_v0  ;;  %v1659_v1 = vmov (!%p1383_p9), 1   ;;  %v1660_v2 = vmov (!%p1383_p9), 0.0  }
  0x1f   : > { %s1758_s18 = scalar_lea.vmem %s1951_s1, %s1382_s15  ;;  %412 = vst.msk [vmem:[#allocation3] sm:$0x3] (!%p1383_p9), %vm411_vm1, %v1659_v1 }
  0x20   : > { %414 = vst.msk [vmem:[#allocation4] sm:$0x1] (!%p1383_p9), %vm413_vm2, %v1660_v2  ;;  %415 = vst.msk [vmem:[#allocation5] sm:$0x1] (!%p1383_p9), %vm413_vm2, %v1660_v2 }
  0x24 PF: > { %v425_v4 = vld [vmem:[%s1954_s4] sm:$0xff]  ;;  %v426_v5 = vld [vmem:[%s1954_s4 + $0x8] sm:$0xff]  ;;  %v1661_v6 = vmov 0   ;;  %v1662_v7 = vmov 0.0|0.0   ;;  %v427_v9 = vld [vmem:[%s1954_s4 + $0x10] sm:$0xff]  ;;  %vm1663_vm3 = vmmov 0   ;;  %v417_v16 = vlaneseq }
  0x25   : > { %1583 = vset.pattern.permute.xlu0 %v1661_v6  ;;  %1520 = vmatprep.subr.bf16.mxu0 %v1662_v7  ;;  %v1521_v8 = vpack.c.bf16 %v426_v5, %v425_v4  ;;  %v428_v10 = vld [vmem:[%s1954_s4 + $0x18] sm:$0xff]  ;;  %v1664_v12 = vmov 0.0   ;;  %v504_v13 = vld [vmem:[%s1955_s5] sm:$0xff]  ;;  %v505_v14 = vld [vmem:[%s1955_s5 + $0x8] sm:$0xff]  ;;  %vm429_vm4 = vcmask 261120   ;;  %vm513_vm6 = vcmask 130048  }
  0x26   : > { %v416_v3 = vld [vmem:[#allocation3] sm:$0x3]  ;;  %1526 = vmatprep.subr.bf16.mxu1 %v1662_v7  ;;  %v1524_v11 = vpack.c.bf16 %v428_v10, %v427_v9  ;;  %1449 = vmatprep.mubr.msk.f32.mxu0 %vm1663_vm3, %v1664_v12  ;;  %v1527_v15 = vpack.c.bf16 %v505_v14, %v504_v13  ;;  %v1791_v17 = vand.u32 127, %v417_v16  ;;  %v588_v21 = vld [vmem:[%s1956_s6 + $0x8] sm:$0xff]  ;;  %v589_v23 = vld [vmem:[%s1956_s6 + $0x10] sm:$0xff]  ;;  %s1665_s28 = smov 64  }
  0x27   : > { %420 = vperm.xlu0 %1583, %v416_v3   ;;  %1522 = vmatpush3.bf16.msra.mxu0 %v1521_v8  ;;  %v587_v20 = vld [vmem:[%s1956_s6] sm:$0xff]  ;;  %v590_v24 = vld [vmem:[%s1956_s6 + $0x18] sm:$0xff]  ;;  %s1666_s29 = smov 32   ;;  %s1667_s19 = smov 96   ;;  %v1668_v48 = vmov 1966171168  }
  0x28   : > { %1523 = vmatprep.subr.bf16.mxu0 %v1662_v7  ;;  %1456 = vmatprep.mubr.msk.f32.mxu1 %vm1663_vm3, %v1664_v12  ;;  %v1530_v22 = vpack.c.bf16 %v588_v21, %v587_v20  ;;  %v1533_v27 = vpack.c.bf16 %v590_v24, %v589_v23  ;;  %v503_v28 = vld [vmem:[#allocation2] sm:$0x3]  ;;  %v709_v49 = vunpack.c.l.s4 %v1668_v48  ;;  %v712_v50 = vshrl.u32 %v417_v16, 7  ;;  %v707_v2 = vld [vmem:[%s1953_s3 + $0x8] sm:$0xff]  ;;  %p1561_p10 = scmp.eq.s32.totalorder %s1749_s0, 5 }
  0x29   : > { %1528 = vmatpush3.bf16.msra.mxu1 %v1527_v15  ;;  %v1388_v31 = vld [vmem:[%s1958_s8] ss:$0 sm:$0xff]  ;;  %vm892_vm7 = vcmask 57344   ;;  %vm704_vm8 = vcmask 254976   ;;  %vm915_vm9 = vcmask 64512   ;;  %vm1065_vm10 = vcmask 1041409  }
  0x2a   : > { %1529 = vmatprep.subr.bf16.mxu1 %v1662_v7  ;;  %v1386_v35 = vld [vmem:[%s1957_s7] ss:$0 sm:$0xff]  ;;  %v710_v51 = vunpack.c.0.s8 %v709_v49  ;;  %v732_v60 = vsub.s32 0, %v712_v50  ;;  %vm1086_vm11 = vcmask 523264   ;;  %vm1272_vm14 = vcmask 1024  }
  0x2b   : > { %1525 = vmatpush3.bf16.msra.mxu0 %v1524_v11  ;;  %v706_v47 = vld [vmem:[%s1953_s3] sm:$0xff]  ;;  %vm1286_vm1 = vcmask 0  }
  0x2c   : > { %1470 = vmatprep.subr.mxu0 %v1664_v12  ;;  %v713_v56 = vsub.s32 %v710_v51, %v712_v50  ;;  %v1851_v24 = vld [vmem:[%s1758_s18] sm:$0x3]  ;;  %s1669_s18 = smov [#allocation8]  }
  0x2d   : > { %vm1267_vm13 = vcmp.ne.s32.totalorder %v1851_v24, 0  ;;  %s1339_s22 = sshll.u32 %s1669_s18, 4  ;;  %s1340_s22 = int_to_ptr.vmem [resolvable:$true] %s1339_s22 }
  0x2e   : > { %s1618_s23 = scalar_lea.vmem %s1340_s22, 16  ;;  %s1624_s24 = scalar_lea.vmem %s1340_s22, 32 }
  0x2f   : > { %p1619_p11 = scmp.ne.s32.totalorder %s1340_s22, %s1618_s23  ;;  %p1625_p0 = scmp.lt.s32.totalorder %s1340_s22, %s1340_s22 }
  0x30   : > { %p1626_p1 = scmp.lt.s32.totalorder %s1624_s24, %s1618_s23 }
  0x31   : > { %p1620_p12 = pnand %p1619_p11, %p1561_p10 }
  0x32   : > { %p1627_p2 = por %p1626_p1, %p1625_p0 }
  0x33   : > { %p1621_p13 = pneg %p1620_p12 }
  0x35   : > { %p1628_p3 = pnand %p1627_p2, %p1621_p13 }
  0xa6   : > { %v421_v18 = vpop.permute.xlu0 %420 }
  0xa7   : > { %vm422_vm5 = vcmp.eq.s32.totalorder %v1791_v17, %v421_v18 }
  0xa8   : > { %v1384_v19 = vsel %vm422_vm5, 1.0, %v1664_v12 }
  0xa9   : > { %1450 = vmatmul.mubr.msk.f32.vlgmr.msra.gmra.mrb[0].mxu0 %vm429_vm4, %v1384_v19 }
  0xaa   : > { %1472 = vmatprep.mubr.msk.f32.mxu0 %vm1663_vm3, %v1664_v12  ;;  %1471 = vmatpush3.xpose.msk.msra.mxu0 %vm429_vm4, %v706_v47 }
  0xab   : > { %1475 = vmatprep.subr.mxu0 %v1664_v12 }
 0x17c   : > { %v499_v25 = vpop.f32.mrb[0].mxu0 }
 0x17d   : > { %v1451_v26 = vpop.f32.mrb[1].mxu0  ;;  %1457 = vmatmul.mubr.msk.f32.vlgmr.msra.gmra.mrb[0].mxu1 %vm513_vm6, %v499_v25 }
 0x17e   : > { %1531 = vmatpush3.bf16.msra.mxu1 %v1530_v22  ;;  %1467 = vmatprep.mubr.msk.f32.mxu1 %vm1663_vm3, %v1664_v12 }
 0x17f   : > { %1532 = vmatprep.subr.bf16.mxu1 %v1662_v7 }
 0x182   : > { %1534 = vmatpush3.bf16.msra.mxu1 %v1533_v27 }
 0x183   : > { %1480 = vmatprep.subr.mxu1 %v1664_v12 }
 0x185   : > { %1468 = vmatmul.mubr.msk.f32.vlgmr.msra.gmra.mrb[2].mxu1 %vm429_vm4, %v503_v28 }
 0x186   : > { %1482 = vmatprep.mubr.msk.f32.mxu1 %vm1663_vm3, %v1664_v12  ;;  %1481 = vmatpush3.msra.mxu1 %v706_v47 }
 0x187   : > { %1535 = vmatprep.subr.bf16.mxu1 %v1662_v7 }
 0x250   : > { %v583_v29 = vpop.f32.mrb[0].mxu1 }
 0x251   : > { %v1458_v30 = vpop.f32.mrb[1].mxu1  ;;  %v584_v36 = vadd.f32 %v1386_v35, %v583_v29 }
 0x258   : > { %v667_v32 = vpop.f32.mrb[2].mxu1 }
 0x259   : > { %v668_v33 = vadd.f32 %v1388_v31, %v667_v32  ;;  %v1469_v34 = vpop.f32.mrb[3].mxu1  ;;  %v1071_v32 = vld [vmem:[%s1959_s9] sm:$0xff] }
 0x25a   : > { %v1073_v34 = vld [vmem:[%s1959_s9 + $0x10] sm:$0xff] }
 0x25b   : > { %679 = vrot.lane.b32.xlu0 %v668_v33, %s1665_s28  ;;  %v671_v37 = vadd.f32 %v668_v33, %v584_v36  ;;  %v1072_v33 = vld [vmem:[%s1959_s9 + $0x8] sm:$0xff] }
 0x25c   : > { %v1536_v35 = vpack.c.bf16 %v1072_v33, %v1071_v32 }
 0x25d   : > { %v1390_v38 = vmul.f32 -1.442695, %v671_v37 }
 0x25f   : > { %695 = vrot.lane.b32.xlu0 %v503_v28, %s1666_s29  ;;  %1584 = vpow2.f32 %v1390_v38  ;;  %v1075_v38 = vld [vmem:[%s1959_s9 + $0x20] sm:$0xff] }
 0x269   : > { %v1585_v39 = vpop.eup %1584 }
 0x26a   : > { %v675_v40 = vadd.f32 1.0, %v1585_v39  ;;  %v1076_v39 = vld [vmem:[%s1959_s9 + $0x28] sm:$0xff] }
 0x26c   : > { %1586 = vrcp.f32 %v675_v40  ;;  %v1542_v40 = vpack.c.bf16 %v1076_v39, %v1075_v38 }
 0x276   : > { %v1587_v41 = vpop.eup %1586 }
 0x277   : > { %v689_v53 = vsub.f32 1.0, %v1587_v41 }
 0x2cd   : > { %v680_v42 = vpop.permute.xlu0 %679 }
 0x2ce   : > { %v682_v43 = vmul.f32 %v1587_v41, %v680_v42  ;;  %v1078_v42 = vld [vmem:[%s1959_s9 + $0x38] sm:$0xff] }
 0x2d0   : > { %684 = vrot.lane.b32.xlu1 %v682_v43, %s1665_s28 }
 0x2d1   : > { %v696_v52 = vpop.permute.xlu0 %695 }
 0x2d2   : > { %v698_v55 = vmul.f32 %v1587_v41, %v696_v52  ;;  %v1077_v41 = vld [vmem:[%s1959_s9 + $0x30] sm:$0xff]  ;;  %v1161_v52 = vld [vmem:[%s1961_s11] sm:$0xff] }
 0x2d3   : > { %v1545_v43 = vpack.c.bf16 %v1078_v42, %v1077_v41 }
 0x342   : > { %v685_v44 = vpop.permute.xlu1 %684 }
 0x343   : > { %v687_v45 = vadd.f32 %v685_v44, %v584_v36  ;;  %v1074_v36 = vld [vmem:[%s1959_s9 + $0x18] sm:$0xff] }
 0x344   : > { %v1539_v37 = vpack.c.bf16 %v1074_v36, %v1073_v34 }
 0x345   : > { %1588 = vtanh.f32 %v687_v45 }
 0x34f   : > { %v1589_v46 = vpop.eup %1588 }
 0x350   : > { %691 = vrot.lane.b32.xlu1 %v1589_v46, %s1667_s19 }
 0x3c2   : > { %v692_v54 = vpop.permute.xlu1 %691 }
 0x3c3   : > { %v694_v57 = vmul.f32 %v692_v54, %v689_v53  ;;  %v1162_v53 = vld [vmem:[%s1961_s11 + $0x8] sm:$0xff]  ;;  %v1163_v54 = vld [vmem:[%s1961_s11 + $0x10] sm:$0xff] }
 0x3c5   : > { %v699_v58 = vadd.f32 %v698_v55, %v694_v57  ;;  %v1548_v55 = vpack.c.bf16 %v1162_v53, %v1161_v52 }
 0x3c7   : > { %v714_v59 = vrot.slane %v699_v58, %v713_v56 }
 0x3c9   : > { %v715_v61 = vcombine.high %v714_v59, %v714_v59  ;;  %v722_v62 = vrot.slane %v714_v59, %v713_v56 }
 0x3cb   : > { %v733_v63 = vrot.slane %v722_v62, %v732_v60  ;;  %v729_v0 = vrot.slane %v715_v61, %v713_v56  ;;  %v1164_v56 = vld [vmem:[%s1961_s11 + $0x18] sm:$0xff] }
 0x3cc   : > { %v1551_v57 = vpack.c.bf16 %v1164_v56, %v1163_v54 }
 0x3cd   : > { %734 = vrot.lane.b32.xlu1 %v733_v63, %s1667_s19  ;;  %v814_v1 = vrot.slane %v729_v0, %v732_v60  ;;  %v1399_v63 = vld [vmem:[%s1962_s12] ss:$0 sm:$0xff] }
 0x3cf   : > { %815 = vrot.lane.b32.xlu0 %v814_v1, %s1667_s19 }
 0x43f   : > { %v735_v3 = vpop.permute.xlu1 %734 }
 0x440   : > { %1473 = vmatmul.mubr.msk.f32.vlgmr.msra.gmra.mrb[2].mxu0 %vm429_vm4, %v735_v3 }
 0x441   : > { %1476 = vmatpush3.xpose.msk.msra.mxu0 %vm429_vm4, %v707_v2  ;;  %1477 = vmatprep.mubr.msk.f32.mxu0 %vm1663_vm3, %v1664_v12  ;;  %v816_v4 = vpop.permute.xlu0 %815 }
 0x442   : > { %1485 = vmatprep.subr.mxu0 %v1664_v12 }
 0x444   : > { %1478 = vmatmul.mubr.msk.f32.vlgmr.msra.gmra.mrb[4].mxu0 %vm429_vm4, %v816_v4 }
 0x445   : > { %1486 = vmatpush3.msra.mxu0 %v707_v2  ;;  %1487 = vmatprep.mubr.msk.f32.mxu0 %vm1663_vm3, %v1664_v12 }
 0x446   : > { %1547 = vmatprep.subr.bf16.mxu0 %v1662_v7 }
 0x513   : > { %v807_v5 = vpop.f32.mrb[2].mxu0 }
 0x514   : > { %v1474_v6 = vpop.f32.mrb[3].mxu0  ;;  %v893_v8 = vsel %vm892_vm7, %v807_v5, -inf }
 0x515   : > { %894 = vmax.xlane.f32.xlu0 %v893_v8 }
 0x517   : > { %v888_v9 = vpop.f32.mrb[4].mxu0 }
 0x518   : > { %v1479_v10 = vpop.f32.mrb[5].mxu0  ;;  %v896_v11 = vsel %vm892_vm7, %v888_v9, -inf }
 0x519   : > { %897 = vmax.xlane.f32.xlu1 %v896_v11 }
 0x5a2   : > { %v895_v13 = vpop.xlane.xlu0 %894 }
 0x5a3   : > { %v899_v14 = vsub.f32 %v807_v5, %v895_v13  ;;  %v1401_v13 = vsel %vm1267_vm13, 1.0, %v1664_v12 }
 0x5a5   : > { %v901_v15 = vmul.f32 1.442695, %v899_v14  ;;  %v1289_v14 = vsel %vm1272_vm14, %v1401_v13, 0.0 }
 0x5a6   : > { %v898_v16 = vpop.xlane.xlu1 %897 }
 0x5a7   : > { %1590 = vpow2.f32 %v901_v15  ;;  %v900_v18 = vsub.f32 %v888_v9, %v898_v16 }
 0x5a9   : > { %v903_v19 = vmul.f32 1.442695, %v900_v18 }
 0x5ab   : > { %1592 = vpow2.f32 %v903_v19 }
 0x5b1   : > { %v1591_v20 = vpop.eup %1590 }
 0x5b2   : > { %v905_v21 = vsel %vm892_vm7, %v1591_v20, 0.0 }
 0x5b3   : > { %906 = vadd.xlane.f32.xlu1 %v905_v21 }
 0x5b5   : > { %v1593_v22 = vpop.eup %1592 }
 0x5b6   : > { %v908_v23 = vsel %vm892_vm7, %v1593_v22, 0.0 }
 0x5b7   : > { %909 = vadd.xlane.f32.xlu0 %v908_v23 }
 0x5cd   : > { %701 = vrot.lane.b32.xlu0 %v699_v58, %s1667_s19  ;;  %v1397_v58 = vld [vmem:[%s1960_s10] ss:$0 sm:$0xff] }
 0x5d1   : > { %1259 = vperm.xlu0 %1583, %v1851_v24  }
 0x640   : > { %v907_v25 = vpop.xlane.xlu1 %906 }
 0x641   : > { %1594 = vrcp.f32 %v907_v25 }
 0x644   : > { %v910_v26 = vpop.xlane.xlu0 %909 }
 0x645   : > { %1596 = vrcp.f32 %v910_v26 }
 0x648   : > { %v702_v27 = vpop.permute.xlu0 %701 }
 0x649   : > { %705 = vst.msk [vmem:[#allocation2] sm:$0x3] %vm704_vm8, %v702_v27 }
 0x64b   : > { %v1595_v28 = vpop.eup %1594 }
 0x64c   : > { %v913_v29 = vmul.f32 %v1595_v28, %v1591_v20 }
 0x64e   : > { %1483 = vmatmul.mubr.msk.f32.vlgmr.msra.gmra.mrb[4].mxu1 %vm915_vm9, %v913_v29 }
 0x64f   : > { %v1597_v30 = vpop.eup %1596  ;;  %1506 = vmatprep.mubr.msk.f32.mxu1 %vm1663_vm3, %v1664_v12  ;;  %1537 = vmatpush3.bf16.msra.mxu1 %v1536_v35 }
 0x650   : > { %v914_v31 = vmul.f32 %v1597_v30, %v1593_v22  ;;  %1538 = vmatprep.subr.bf16.mxu1 %v1662_v7  ;;  %v1260_v0 = vpop.permute.xlu0 %1259 }
 0x651   : > { %vm1261_vm12 = vcmp.eq.s32.totalorder %v1791_v17, %v1260_v0 }
 0x652   : > { %1488 = vmatmul.mubr.msk.f32.vlgmr.msra.gmra.mrb[6].mxu0 %vm915_vm9, %v914_v31 }
 0x653   : > { %1517 = vmatprep.mubr.msk.f32.mxu0 %vm1663_vm3, %v1664_v12  ;;  %1540 = vmatpush3.bf16.msra.mxu1 %v1539_v37 }
 0x654   : > { %1541 = vmatprep.subr.bf16.mxu1 %v1662_v7  ;;  %1549 = vmatpush3.bf16.msra.mxu0 %v1548_v55 }
 0x655   : > { %1550 = vmatprep.subr.bf16.mxu0 %v1662_v7 }
 0x657   : > { %1543 = vmatpush3.bf16.msra.mxu1 %v1542_v40 }
 0x658   : > { %1544 = vmatprep.subr.bf16.mxu1 %v1662_v7  ;;  %1552 = vmatpush3.bf16.msra.mxu0 %v1551_v57 }
 0x65b   : > { %1546 = vmatpush3.bf16.msra.mxu1 %v1545_v43 }
 0x721   : > { %v985_v44 = vpop.f32.mrb[4].mxu1 }
 0x722   : > { %v1484_v45 = vpop.f32.mrb[5].mxu1 }
 0x723   : > { %v1288_v45 = vld [vmem:[#allocation5] sm:$0x1] }
 0x725   : > { %v1058_v46 = vpop.f32.mrb[6].mxu0 }
 0x726   : > { %v1064_v47 = vrot.slane %v1058_v46, 7  ;;  %v1489_v48 = vpop.f32.mrb[7].mxu0  ;;  %v1270_v46 = vld [vmem:[#allocation4] sm:$0x1] }
 0x728   : > { %v1066_v49 = vsel %vm1065_vm10, %v1064_v47, %v985_v44 }
 0x729   : > { %1067 = vrot.lane.b32.xlu1 %v1066_v49, %s1666_s29 }
 0x79b   : > { %v1068_v50 = vpop.permute.xlu1 %1067 }
 0x79c   : > { %v1070_v51 = vsel %vm429_vm4, %v702_v27, %v1068_v50 }
 0x79d   : > { %1507 = vmatmul.mubr.msk.f32.vlgmr.msra.gmra.mrb[6].mxu1 %vm1086_vm11, %v1070_v51 }
 0x870   : > { %v1156_v59 = vpop.f32.mrb[6].mxu1 }
 0x871   : > { %v1157_v60 = vadd.f32 %v1397_v58, %v1156_v59  ;;  %v1508_v61 = vpop.f32.mrb[7].mxu1 }
 0x873   : > { %1598 = vtanh.f32 %v1157_v60 }
 0x87d   : > { %v1599_v62 = vpop.eup %1598 }
 0x87e   : > { %1518 = vmatmul.mubr.msk.f32.vlgmr.msra.gmra.mrb[8].mxu0 %vm429_vm4, %v1599_v62 }
 0x951   : > { %v1241_v1 = vpop.f32.mrb[8].mxu0 }
 0x952   : > { %v1242_v2 = vadd.f32 %v1399_v63, %v1241_v1  ;;  %v1519_v7 = vpop.f32.mrb[9].mxu0 }
 0x954   : > { %v1245_v3 = vsel %vm704_vm8, %v1242_v2, -inf  ;;  %v1262_v4 = vsel %vm1261_vm12, %v1242_v2, 0.0 }
 0x955   : > { %1246 = vmax.xlane.f32.xlu1 %v1245_v3  ;;  %v1263_v5 = vsel %vm704_vm8, %v1262_v4, 0.0 }
 0x959   : > { %1264 = vadd.xlane.f32.xlu1 %v1263_v5 }
 0x95d   : > { %1290 = vadd.xlane.f32.xlu1 %v1289_v14 }
 0x9e2   : > { %v1247_v6 = vpop.xlane.xlu1 %1246 }
 0x9e3   : > { %v1248_v8 = vsub.f32 %v1242_v2, %v1247_v6  ;;  %vm1308_vm15 = vcmp.eq.f32.partialorder %v1242_v2, %v1247_v6 }
 0x9e4   : > { %v1309_v19 = vsel %vm1308_vm15, %v1791_v17, 32 }
 0x9e5   : > { %v1249_v9 = vmul.f32 1.442695, %v1248_v8  ;;  %v1310_v23 = vsel %vm704_vm8, %v1309_v19, 2147483647 }
 0x9e6   : > { %v1265_v21 = vpop.xlane.xlu1 %1264  ;;  %v1312_v26 = vshra.s32 %v1310_v23, 16  ;;  %v1311_v33 = vand.u32 65535, %v1310_v23 }
 0x9e7   : > { %1600 = vpow2.f32 %v1249_v9 }
 0x9e8   : > { %v1314_v12 = vcvt.s32.f32 %v1312_v26  ;;  %v1313_v37 = vcvt.s32.f32 %v1311_v33 }
 0x9ea   : > { %v1291_v28 = vpop.xlane.xlu1 %1290 }
 0x9eb   : > { %v1292_v29 = vrot.slane %v1291_v28, 4 }
 0x9ed   : > { %v1293_v30 = vadd.f32 %v1292_v29, %v1291_v28 }
 0x9ef   : > { %v1294_v31 = vrot.slane %v1293_v30, 2 }
 0x9f1   : > { %v1601_v10 = vpop.eup %1600  ;;  %v1295_v17 = vadd.f32 %v1294_v31, %v1293_v30 }
 0x9f2   : > { %v1251_v11 = vsel %vm704_vm8, %v1601_v10, 0.0 }
 0x9f3   : > { %1252 = vadd.xlane.f32.xlu0 %v1251_v11  ;;  %v1296_v40 = vrot.slane %v1295_v17, 1 }
 0x9f5   : > { %v1297_v43 = vadd.f32 %v1296_v40, %v1295_v17 }
 0xa80   : > { %v1253_v15 = vpop.xlane.xlu0 %1252 }
 0xa81   : > { %1602 = vlog2.f32 %v1253_v15 }
 0xa8b   : > { %v1603_v16 = vpop.eup %1602 }
 0xa8c   : > { %v1255_v18 = vmul.f32 0.6931472, %v1603_v16 }
 0xa8e   : > { %v1256_v20 = vadd.f32 %v1255_v18, %v1247_v6 }
 0xa90   : > { %v1266_v22 = vsub.f32 %v1265_v21, %v1256_v20 }
 0xa92   : > { %v1271_v25 = vmul.f32 %v1401_v13, %v1266_v22 }
 0xa94   : > { %v1273_v27 = vsel %vm1272_vm14, %v1271_v25, 0.0 }
 0xa95   : > { %1274 = vadd.xlane.f32.xlu0 %v1273_v27 }
 0xa99   : > { %1315 = vmin.xlane.f32.xlu0 %v1314_v12 }
 0xb22   : > { %v1275_v32 = vpop.xlane.xlu0 %1274 }
 0xb23   : > { %v1276_v34 = vrot.slane %v1275_v32, 4 }
 0xb25   : > { %v1277_v35 = vadd.f32 %v1276_v34, %v1275_v32 }
 0xb26   : > { %v1316_v36 = vpop.xlane.xlu0 %1315 }
 0xb27   : > { %v1278_v38 = vrot.slane %v1277_v35, 2  ;;  %vm1317_vm0 = vcmp.eq.f32.partialorder %v1314_v12, %v1316_v36 }
 0xb28   : > { %v1318_v39 = vsel %vm1317_vm0, %v1313_v37, inf }
 0xb29   : > { %1319 = vmin.xlane.f32.xlu1 %v1318_v39  ;;  %v1279_v41 = vadd.f32 %v1278_v38, %v1277_v35 }
 0xb2b   : > { %v1280_v42 = vrot.slane %v1279_v41, 1 }
 0xb2d   : > { %v1281_v44 = vadd.f32 %v1280_v42, %v1279_v41 }
 0xb2f   : > { %1553 = vpush %v1281_v44 }
 0xb30   : > { %1555 = vpush %v1297_v43 }
 0xb60   : > { %s1554_s19 = spop %1553 }
 0xb61   : > { %s1283_s20 = ssub.f32 0.0, %s1554_s19  ;;  %s1556_s21 = spop %1555 }
 0xb62   : > { %v1299_v47 = vstv %s1556_s21 }
 0xb63   : > { %v1284_v48 = vstv %s1283_s20  ;;  %v1300_v49 = vadd.f32 %v1299_v47, %v1288_v45 }
 0xb64   : > { %v1285_v50 = vadd.f32 %v1284_v48, %v1270_v46 }
 0xb65   : > { %1301 = vst.msk [vmem:[#allocation5] sm:$0x1] %vm1286_vm1, %v1300_v49 }
 0xb66   : > { %1287 = vst.msk [vmem:[#allocation4] sm:$0x1] %vm1286_vm1, %v1285_v50 }
 0xb6c   : > { %v1303_v51 = vld [vmem:[#allocation5] sm:$0x1] }
 0xb6d   : > { %v1304_v52 = vmax.f32 %v1303_v51, 1.0  ;;  %v1302_v54 = vld [vmem:[#allocation4] sm:$0x1] }
 0xb6f   : > { %1604 = vrcp.f32 %v1304_v52 }
 0xb79   : > { %v1605_v53 = vpop.eup %1604 }
 0xb7a   : > { %v1306_v55 = vmul.f32 %v1605_v53, %v1302_v54 }
 0xb7c   : > { %1307 = vst.msk [vmem:[#allocation8] sm:$0x1] %vm1286_vm1, %v1306_v55 }
 0xb7d   : > { %1631 = shalt.err (!%p1628_p3)
}
 0xb7e   : > { %s1632_s27 = scalar_lea.hbm %s1963_s13, 16 }
 0xb7f   : > { %p1633_p4 = scmp.ne.s32.totalorder %s1963_s13, %s1632_s27  ;;  %p1638_p7 = scmp.lt.u32.totalorder %s1632_s27, %s1963_s13 }
 0xb81   : > { %p1634_p5 = pnand %p1633_p4, %p1561_p10 }
 0xb83   : > { %p1635_p6 = pneg %p1634_p5 }
 0xb85   : > { %p1640_p8 = pnand %p1638_p7, %p1635_p6 }
 0xb87   : > { %1643 = shalt.err (!%p1640_p8)
}
 0xb88   : > { %1558 = dma.vmem_to_hbm [thread:$0]  (%p1561_p10), %s1340_s22, 16, %s1963_s13, [#allocation9]   ;;  %v1322_v56 = vcvt.f32.s32 %v1316_v36 }
 0xb89   : > { %s1325_s19 = sld [smem:[#allocation7 + %s1749_s0]] }
 0xb8a   : > { %v1323_v59 = vshll.u32 %v1322_v56, 16 }
 0xb8f   : > { %p1326_p9 = scmp.gt.s32.totalorder %s1325_s19, 0 }
 0xb91   : > { %s1327_s20 = scalar_select %p1326_p9, 1, 0 }
 0xb93   : > { %v1328_v57 = vstv %s1327_s20 }
 0xb94   : > { %vm1329_vm2 = vcmp.eq.s32.totalorder %v1328_v57, 1 }
 0xbb6   : > { %v1320_v58 = vpop.xlane.xlu1 %1319 }
 0xbb7   : > { %v1321_v60 = vcvt.f32.s32 %v1320_v58 }
 0xbb9   : > { %v1324_v61 = vadd.s32 %v1323_v59, %v1321_v60 }
 0xbbb   : > { %v1330_v62 = vsel %vm1329_vm2, %v1851_v24, %v1324_v61 }
 0xbbc   : > { %1331 = vst.msk [vmem:[#allocation3] sm:$0x3] %vm1272_vm14, %v1330_v62 }
 0xbbd   : > { %1651 = dma.done.wait (%p1561_p10), [#allocation9], 16  }
 0xbbe   : > { %1653 = vsyncadd (%p1561_p10), [#allocation9], 4294967280 }
 0xbbf PF: > { %s30_s30 = sadd.s32 1, %s1656_s30  }
 0xbc0   : > { %p27_p11 = scmp.ge.s32.totalorder %s30_s30, 8  }
 0xbc2   :  { %29 = sbr.rel (!%p27_p11) target bundleno = 16 (0x10), region = 99 }
 0xbc9   :  { %1352 = vsyncpa [#allocation9], 1 }
 0xbca   :  { %1354 = vsyncpa [#allocation9 + $0x1], 1 }

</bundles_post_ra>
